<compile_context>
chip_gen: v5e
topology: v5e:2x2
jax: 0.10.0
libtpu: 0.0.40
codegen_flags: <defaults>
</compile_context>

<pallas_src>
import functools
import math

import jax
import jax.numpy as jnp
from jax.experimental import pallas as pl
from jax.experimental.pallas import tpu as pltpu


def _round_up(v, m):
    return ((v + m - 1) // m) * m


def _pad2d(a, rows, cols, dtype):
    r, c = a.shape
    return jnp.pad(a.astype(dtype), ((0, rows - r), (0, cols - c)))


def _vmem_capacity_bytes():
    try:
        return int(pltpu.get_tpu_info().vmem_capacity_bytes)
    except Exception:
        return 64 * 1024 * 1024   # conservative (v7x per-TC VMEM)


def _vmem_limit(need_bytes):
    cap = _vmem_capacity_bytes()
    return int(min(max(need_bytes * 5 // 4 + (2 << 20), 32 << 20), cap))


def _prepare(x, adj, w1, b1, w2, b2, tm):
    """Pad to lane-dense shapes and hoist s1 = x @ W1 + b1 to an XLA GEMM."""
    n, nfeat = x.shape
    nhid = w1.shape[1]
    nclass = w2.shape[1]

    assert tm % 128 == 0, "tm must be a multiple of 128 (lane width)"
    tm = min(tm, _round_up(n, 128))
    n_p = _round_up(n, tm)          # node dim padded to row-tile multiple
    f_p = _round_up(nfeat, 128)     # lane-dense feature dims
    h_p = _round_up(nhid, 128)
    c_p = _round_up(nclass, 128)

    # Zero padding keeps the math exact (padded adj cols are zero, so the
    # bias-only padded rows of s1/s2 never contribute).
    adj_p = _pad2d(adj, n_p, n_p, jnp.bfloat16)
    x_p = _pad2d(x, n_p, f_p, jnp.bfloat16)
    w1_p = _pad2d(w1, f_p, h_p, jnp.bfloat16)
    w2_p = _pad2d(w2, h_p, c_p, jnp.bfloat16)
    b1_p = _pad2d(b1.reshape(1, -1), 1, h_p, jnp.float32)
    b2_p = _pad2d(b2.reshape(1, -1), 1, c_p, jnp.float32)

    # Perf feedback: hoist the (possibly huge-nfeat) dense transform out of the
    # kernel; XLA runs it at peak (and across both TCs on v7x).
    s1_p = (jnp.dot(x_p, w1_p, preferred_element_type=jnp.float32)
            + b1_p).astype(jnp.bfloat16)

    dims = dict(n=n, nclass=nclass, tm=tm, n_p=n_p, h_p=h_p, c_p=c_p)
    return adj_p, s1_p, w2_p, b2_p, dims


# ---------------------------------------------------------------------------
# Fused single-call kernel (layers 1+2; adj read from HBM once when resident)
# ---------------------------------------------------------------------------
def fused_gcn_kernel(adj_ref, s1_ref, w2_ref, b2_ref, o_ref,
                     h_ref, s2_ref, *adj_scratch,
                     tm, use_relu, adj_resident):
    """Grid = (phase, row_tile), phase outermost, sequential.

    phase 0:  h[tile i]   = relu(adj[tile i] @ s1)      -> VMEM scratch
    phase 1:  (i == 0)    s2 = h @ W2 + b2              -> VMEM scratch
              out[tile i] = adj[tile i] @ s2
    When adj_resident, adj lives in a single-buffered VMEM scratch filled by
    one manual DMA at (phase 0, i 0) and is never re-read from HBM.
    """
    phase = pl.program_id(0)
    i = pl.program_id(1)
    row0 = pl.multiple_of(i * tm, tm)

    if adj_resident:
        adj_vmem_ref, adj_sem = adj_scratch

        @pl.when(jnp.logical_and(phase == 0, i == 0))
        def _():
            cp = pltpu.make_async_copy(adj_ref, adj_vmem_ref, adj_sem)
            cp.start()
            cp.wait()

        def adj_tile():
            return adj_vmem_ref[pl.ds(row0, tm), :]
    else:
        def adj_tile():
            return adj_ref[...]   # streamed (tm, n_p) row tile

    @pl.when(phase == 0)
    def _():
        ht = jnp.dot(adj_tile(), s1_ref[...],
                     preferred_element_type=jnp.float32)
        if use_relu:
            ht = jnp.maximum(ht, 0.0)
        h_ref[pl.ds(row0, tm), :] = ht.astype(h_ref.dtype)
        # NOTE: no o_ref write in phase 0 -- out index_map pins block 0 here,
        # so nothing is flushed to HBM until phase 1 overwrites it.

    @pl.when(jnp.logical_and(phase == 1, i == 0))
    def _():
        s2 = jnp.dot(h_ref[...], w2_ref[...],
                     preferred_element_type=jnp.float32) + b2_ref[...]
        s2_ref[...] = s2.astype(s2_ref.dtype)

    @pl.when(phase == 1)
    def _():
        o_ref[...] = jnp.dot(
            adj_tile(), s2_ref[...],
            preferred_element_type=jnp.float32).astype(o_ref.dtype)


@functools.partial(jax.jit, static_argnames=("use_relu", "tm", "force_stream"))
def gcn_forward(x, adj, w1, b1, w2, b2, *, use_relu=True, tm=256,
                force_stream=False):
    """Two-layer GCN forward (inference mode: dropout is identity)."""
    adj_p, s1_p, w2_p, b2_p, d = _prepare(x, adj, w1, b1, w2, b2, tm)
    n, nclass = d["n"], d["nclass"]
    tm, n_p, h_p, c_p = d["tm"], d["n_p"], d["h_p"], d["c_p"]
    n_tiles = n_p // tm

    # VMEM footprint (bytes) per strategy.
    resident_need = (n_p * n_p * 2            # adj, single-buffered scratch
                     + n_p * h_p * 2          # h scratch
                     + n_p * c_p * 2          # s2 scratch
                     + 2 * n_p * h_p * 2      # s1 input (dbl-buffered)
                     + 2 * h_p * c_p * 2      # W2
                     + 2 * tm * c_p * 4)      # output tile (f32)
    stream_need = (resident_need - n_p * n_p * 2
                   + 2 * tm * n_p * 2)        # adj row tiles (dbl-buffered)

    budget = (_vmem_capacity_bytes() * 3) // 4
    adj_resident = (not force_stream) and (resident_need <= budget)

    if adj_resident:
        adj_spec = pl.BlockSpec(memory_space=pl.ANY)   # raw HBM ref, 1 manual DMA
        extra_scratch = [pltpu.VMEM((n_p, n_p), jnp.bfloat16),
                         pltpu.SemaphoreType.DMA(())]
        adj_hbm_bytes = adj_p.size * 2                 # read once total
        need = resident_need
    else:
        adj_spec = pl.BlockSpec((tm, n_p), lambda p, i: (i, 0))
        extra_scratch = []
        adj_hbm_bytes = 2 * adj_p.size * 2             # once per phase
        need = stream_need

    flops = 2 * (n_p * n_p * h_p + n_p * h_p * c_p + n_p * n_p * c_p)
    bytes_accessed = (adj_hbm_bytes + s1_p.size * 2 + w2_p.size * 2
                      + b2_p.size * 4 + n_p * c_p * 4)

    kernel = functools.partial(fused_gcn_kernel, tm=tm, use_relu=use_relu,
                               adj_resident=adj_resident)
    out_p = pl.pallas_call(
        kernel,
        out_shape=jax.ShapeDtypeStruct((n_p, c_p), jnp.float32),
        grid_spec=pltpu.PrefetchScalarGridSpec(
            num_scalar_prefetch=0,
            grid=(2, n_tiles),   # (phase, row tile); phase outermost
            in_specs=[
                adj_spec,                                        # adj
                pl.BlockSpec((n_p, h_p), lambda p, i: (0, 0)),   # s1 (resident)
                pl.BlockSpec((h_p, c_p), lambda p, i: (0, 0)),   # W2
                pl.BlockSpec((1, c_p), lambda p, i: (0, 0)),     # b2
            ],
            # Phase 0 maps every step to output block 0 (resident, never
            # flushed until phase 1 rewrites it) -> no wasted HBM writeback.
            out_specs=pl.BlockSpec((tm, c_p), lambda p, i: (i * p, 0)),
            scratch_shapes=[
                pltpu.VMEM((n_p, h_p), jnp.bfloat16),   # h = relu(adj@s1)
                pltpu.VMEM((n_p, c_p), jnp.bfloat16),   # s2 = h@W2 + b2
            ] + extra_scratch,
        ),
        compiler_params=pltpu.CompilerParams(
            # Scratch (h/s2/adj) is shared across row tiles and phases, so the
            # grid must run sequentially on one TensorCore.  Use
            # gcn_forward_megacore for v7x 2-TC parallelism.
            dimension_semantics=("arbitrary", "arbitrary"),
            vmem_limit_bytes=_vmem_limit(need),
        ),
        cost_estimate=pl.CostEstimate(
            flops=flops, transcendentals=0, bytes_accessed=bytes_accessed),
    )(adj_p, s1_p, w2_p, b2_p)

    return out_p[:n, :nclass]


# ---------------------------------------------------------------------------
# Megacore (v7x) variant: two pallas_calls, row-tile axis "parallel"
# ---------------------------------------------------------------------------
def _adj_matmul_kernel(adj_ref, s_ref, o_ref, *, use_relu):
    y = jnp.dot(adj_ref[...], s_ref[...], preferred_element_type=jnp.float32)
    if use_relu:
        y = jnp.maximum(y, 0.0)
    o_ref[...] = y.astype(o_ref.dtype)


def _adj_matmul(adj_p, s_p, *, tm, use_relu, out_dtype):
    n_p = adj_p.shape[0]
    c_p = s_p.shape[1]
    need = (2 * tm * n_p * 2 + 2 * n_p * c_p * 2
            + 2 * tm * c_p * jnp.dtype(out_dtype).itemsize)
    return pl.pallas_call(
        functools.partial(_adj_matmul_kernel, use_relu=use_relu),
        out_shape=jax.ShapeDtypeStruct((n_p, c_p), out_dtype),
        grid_spec=pltpu.PrefetchScalarGridSpec(
            num_scalar_prefetch=0,
            grid=(n_p // tm,),
            in_specs=[pl.BlockSpec((tm, n_p), lambda i: (i, 0)),
                      pl.BlockSpec((n_p, c_p), lambda i: (0, 0))],
            out_specs=pl.BlockSpec((tm, c_p), lambda i: (i, 0)),
        ),
        compiler_params=pltpu.CompilerParams(
            dimension_semantics=("parallel",),   # row tiles independent -> 2 TCs
            vmem_limit_bytes=_vmem_limit(need),
        ),
    )(adj_p, s_p)


@functools.partial(jax.jit, static_argnames=("use_relu", "tm"))
def gcn_forward_megacore(x, adj, w1, b1, w2, b2, *, use_relu=True, tm=256):
    """Two-call variant: each adj matmul is row-tile parallel (v7x megacore);
    h round-trips HBM between the calls (negligible vs. adj traffic)."""
    adj_p, s1_p, w2_p, b2_p, d = _prepare(x, adj, w1, b1, w2, b2, tm)
    n, nclass = d["n"], d["nclass"]
    tm = d["tm"]

    h = _adj_matmul(adj_p, s1_p, tm=tm, use_relu=use_relu,
                    out_dtype=jnp.bfloat16)
    s2_p = (jnp.dot(h, w2_p, preferred_element_type=jnp.float32)
            + b2_p).astype(jnp.bfloat16)
    out_p = _adj_matmul(adj_p, s2_p, tm=tm, use_relu=False,
                        out_dtype=jnp.float32)
    return out_p[:n, :nclass]


# ---------------------------------------------------------------------------
# Params / reference
# ---------------------------------------------------------------------------
def init_params(key, nfeat, nhid, nclass):
    """Mirrors GraphConvolution.init(): weight ~ U(-1/sqrt(in), 1/sqrt(in));
    bias keeps nn.Linear's default bound (same).  Weights stored pre-transposed
    as [in_features, out_features]."""
    k1, k2, k3, k4 = jax.random.split(key, 4)
    stdv1 = 1.0 / math.sqrt(nfeat)
    stdv2 = 1.0 / math.sqrt(nhid)
    w1 = jax.random.uniform(k1, (nfeat, nhid), jnp.float32, -stdv1, stdv1)
    b1 = jax.random.uniform(k2, (1, nhid), jnp.float32, -stdv1, stdv1)
    w2 = jax.random.uniform(k3, (nhid, nclass), jnp.float32, -stdv2, stdv2)
    b2 = jax.random.uniform(k4, (1, nclass), jnp.float32, -stdv2, stdv2)
    return w1, b1, w2, b2


def ref_forward(x, adj, w1, b1, w2, b2, use_relu=True):
    """Plain-JAX reference with the same numerics (bf16 operands, f32 acc)."""
    ab = adj.astype(jnp.bfloat16)
    s1 = (jnp.dot(x.astype(jnp.bfloat16), w1.astype(jnp.bfloat16),
                  preferred_element_type=jnp.float32) + b1).astype(jnp.bfloat16)
    h = jnp.dot(ab, s1, preferred_element_type=jnp.float32)
    if use_relu:
        h = jnp.maximum(h, 0.0)
    h = h.astype(jnp.bfloat16)
    s2 = (jnp.dot(h, w2.astype(jnp.bfloat16),
                  preferred_element_type=jnp.float32) + b2).astype(jnp.bfloat16)
    return jnp.dot(ab, s2, preferred_element_type=jnp.float32)


if __name__ == "__main__":
    # Small synthetic problem with non-128-multiple dims to exercise padding,
    # multiple row tiles, and all three code paths.
    N, NFEAT, NHID, NCLASS = 300, 64, 48, 10
    key = jax.random.PRNGKey(0)
    kx, kadj, kp = jax.random.split(key, 3)

    x = jax.random.normal(kx, (N, NFEAT), jnp.float32)
    # Dense symmetric row-normalized adjacency with self-loops.
    a = (jax.random.uniform(kadj, (N, N)) < 0.05).astype(jnp.float32)
    a = jnp.maximum(a, a.T) + jnp.eye(N, dtype=jnp.float32)
    adj = a / jnp.sum(a, axis=1, keepdims=True)

    w1, b1, w2, b2 = init_params(kp, NFEAT, NHID, NCLASS)
    ref = ref_forward(x, adj, w1, b1, w2, b2, use_relu=True)

    # 1) fused kernel, adj VMEM-resident (default path)
    out_res = jax.block_until_ready(
        gcn_forward(x, adj, w1, b1, w2, b2, use_relu=True, tm=256))
    # 2) fused kernel, streaming fallback (forced)
    out_str = jax.block_until_ready(
        gcn_forward(x, adj, w1, b1, w2, b2, use_relu=True, tm=128,
                    force_stream=True))
    # 3) megacore two-call variant
    out_mc = jax.block_until_ready(
        gcn_forward_megacore(x, adj, w1, b1, w2, b2, use_relu=True, tm=128))

    for name, out in (("resident", out_res), ("stream", out_str),
                      ("megacore", out_mc)):
        assert out.shape == (N, NCLASS), (name, out.shape)
        max_err = float(jnp.max(jnp.abs(out - ref)))
        assert jnp.allclose(out, ref, atol=2e-2, rtol=2e-2), \
            f"{name}: max err {max_err}"

    print("KERNEL_OK")
</pallas_src>

<mosaic_0001>
module attributes {stable_mosaic.version = 11 : i64} {
  func.func @fused_gcn_kernel(%arg0: i32, %arg1: i32, %arg2: memref<512x512xbf16, #tpu.memory_space<any>>, %arg3: memref<512x128xbf16, #tpu.memory_space<vmem>>, %arg4: memref<128x128xbf16, #tpu.memory_space<vmem>>, %arg5: memref<1x128xf32, #tpu.memory_space<vmem>>, %arg6: memref<256x128xf32, #tpu.memory_space<vmem>>, %arg7: memref<512x128xbf16, #tpu.memory_space<vmem>>, %arg8: memref<512x128xbf16, #tpu.memory_space<vmem>>, %arg9: memref<512x512xbf16, #tpu.memory_space<vmem>>, %arg10: memref<!tpu.dma_semaphore, #tpu.memory_space<semaphore_mem>>) attributes {dimension_semantics = [#tpu.dimension_semantics<arbitrary>, #tpu.dimension_semantics<arbitrary>], iteration_bounds = array<i64: 2, 2>, scalar_prefetch = 0 : i64, scratch_operands = 4 : i64, tpu.core_type = #tpu.core_type<tc>, window_params = [{}, {pipeline_mode = #tpu.pipeline_mode<synchronous>, transform_indices = @transform_1, window_bounds = array<i64: 512, 128>}, {pipeline_mode = #tpu.pipeline_mode<synchronous>, transform_indices = @transform_2, window_bounds = array<i64: 128, 128>}, {pipeline_mode = #tpu.pipeline_mode<synchronous>, transform_indices = @transform_3, window_bounds = array<i64: 1, 128>}, {transform_indices = @transform_4, window_bounds = array<i64: 256, 128>}]} {
    %c256_i32 = arith.constant 256 : i32
    %0 = arith.muli %arg1, %c256_i32 : i32
    %1 = tpu.assume_multiple %0, 256 : i32
    %c0_i32 = arith.constant 0 : i32
    %2 = arith.cmpi eq, %arg0, %c0_i32 : i32
    %c0_i32_0 = arith.constant 0 : i32
    %3 = arith.cmpi eq, %arg1, %c0_i32_0 : i32
    %4 = arith.andi %2, %3 : i1
    %5 = arith.extui %4 : i1 to i32
    %c0_i32_1 = arith.constant 0 : i32
    %6 = arith.cmpi ne, %5, %c0_i32_1 : i32
    scf.if %6 {
      tpu.enqueue_dma source(%arg2 : memref<512x512xbf16, #tpu.memory_space<any>>) target(%arg9 : memref<512x512xbf16, #tpu.memory_space<vmem>>) target_semaphore(%arg10 : memref<!tpu.dma_semaphore, #tpu.memory_space<semaphore_mem>>)
      tpu.wait_dma2 semaphore(%arg10 : memref<!tpu.dma_semaphore, #tpu.memory_space<semaphore_mem>>) src(%arg2 : memref<512x512xbf16, #tpu.memory_space<any>>) dst(%arg9 : memref<512x512xbf16, #tpu.memory_space<vmem>>)
    } else {
    }
    %c0_i32_2 = arith.constant 0 : i32
    %7 = arith.cmpi eq, %arg0, %c0_i32_2 : i32
    %8 = arith.extui %7 : i1 to i32
    %c0_i32_3 = arith.constant 0 : i32
    %9 = arith.cmpi ne, %8, %c0_i32_3 : i32
    scf.if %9 {
      %18 = arith.index_cast %1 : i32 to index
      %c0 = arith.constant 0 : index
      %19 = vector.load %arg9[%18, %c0] : memref<512x512xbf16, #tpu.memory_space<vmem>>, vector<256x512xbf16>
      %c0_8 = arith.constant 0 : index
      %c0_9 = arith.constant 0 : index
      %20 = vector.load %arg3[%c0_8, %c0_9] : memref<512x128xbf16, #tpu.memory_space<vmem>>, vector<512x128xbf16>
      %cst = arith.constant dense<0.000000e+00> : vector<256x128xf32>
      %21 = tpu.matmul %19, %20, %cst {dimension_numbers = #tpu.dot_dimension_numbers<[1], [0], [0], [1], [0, 0, 1, 1], [], []>} : vector<256x512xbf16>, vector<512x128xbf16>, vector<256x128xf32> -> vector<256x128xf32>
      %cst_10 = arith.constant 0.000000e+00 : f32
      %22 = vector.broadcast %cst_10 : f32 to vector<256x128xf32>
      %23 = arith.maximumf %21, %22 : vector<256x128xf32>
      %24 = arith.truncf %23 : vector<256x128xf32> to vector<256x128xbf16>
      %25 = arith.index_cast %1 : i32 to index
      %c0_11 = arith.constant 0 : index
      %26 = vector.load %arg7[%25, %c0_11] : memref<512x128xbf16, #tpu.memory_space<vmem>>, vector<256x128xbf16>
      tpu.vector_store %arg7[%25, %c0_11], %24 {strides = array<i32>} : memref<512x128xbf16, #tpu.memory_space<vmem>>, vector<256x128xbf16>,
    } else {
    }
    %c1_i32 = arith.constant 1 : i32
    %10 = arith.cmpi eq, %arg0, %c1_i32 : i32
    %c0_i32_4 = arith.constant 0 : i32
    %11 = arith.cmpi eq, %arg1, %c0_i32_4 : i32
    %12 = arith.andi %10, %11 : i1
    %13 = arith.extui %12 : i1 to i32
    %c0_i32_5 = arith.constant 0 : i32
    %14 = arith.cmpi ne, %13, %c0_i32_5 : i32
    scf.if %14 {
      %c0 = arith.constant 0 : index
      %c0_8 = arith.constant 0 : index
      %18 = vector.load %arg7[%c0, %c0_8] : memref<512x128xbf16, #tpu.memory_space<vmem>>, vector<512x128xbf16>
      %c0_9 = arith.constant 0 : index
      %c0_10 = arith.constant 0 : index
      %19 = vector.load %arg4[%c0_9, %c0_10] : memref<128x128xbf16, #tpu.memory_space<vmem>>, vector<128x128xbf16>
      %cst = arith.constant dense<0.000000e+00> : vector<512x128xf32>
      %20 = tpu.matmul %18, %19, %cst {dimension_numbers = #tpu.dot_dimension_numbers<[1], [0], [0], [1], [0, 0, 1, 1], [], []>} : vector<512x128xbf16>, vector<128x128xbf16>, vector<512x128xf32> -> vector<512x128xf32>
      %c0_11 = arith.constant 0 : index
      %c0_12 = arith.constant 0 : index
      %21 = vector.load %arg5[%c0_11, %c0_12] : memref<1x128xf32, #tpu.memory_space<vmem>>, vector<1x128xf32>
      %22 = vector.broadcast %21 : vector<1x128xf32> to vector<512x128xf32>
      %23 = arith.addf %20, %22 : vector<512x128xf32>
      %24 = arith.truncf %23 : vector<512x128xf32> to vector<512x128xbf16>
      %c0_13 = arith.constant 0 : index
      %c0_14 = arith.constant 0 : index
      %25 = vector.load %arg8[%c0_13, %c0_14] : memref<512x128xbf16, #tpu.memory_space<vmem>>, vector<512x128xbf16>
      tpu.vector_store %arg8[%c0_13, %c0_14], %24 {strides = array<i32>} : memref<512x128xbf16, #tpu.memory_space<vmem>>, vector<512x128xbf16>,
    } else {
    }
    %c1_i32_6 = arith.constant 1 : i32
    %15 = arith.cmpi eq, %arg0, %c1_i32_6 : i32
    %16 = arith.extui %15 : i1 to i32
    %c0_i32_7 = arith.constant 0 : i32
    %17 = arith.cmpi ne, %16, %c0_i32_7 : i32
    scf.if %17 {
      %18 = arith.index_cast %1 : i32 to index
      %c0 = arith.constant 0 : index
      %19 = vector.load %arg9[%18, %c0] : memref<512x512xbf16, #tpu.memory_space<vmem>>, vector<256x512xbf16>
      %c0_8 = arith.constant 0 : index
      %c0_9 = arith.constant 0 : index
      %20 = vector.load %arg8[%c0_8, %c0_9] : memref<512x128xbf16, #tpu.memory_space<vmem>>, vector<512x128xbf16>
      %cst = arith.constant dense<0.000000e+00> : vector<256x128xf32>
      %21 = tpu.matmul %19, %20, %cst {dimension_numbers = #tpu.dot_dimension_numbers<[1], [0], [0], [1], [0, 0, 1, 1], [], []>} : vector<256x512xbf16>, vector<512x128xbf16>, vector<256x128xf32> -> vector<256x128xf32>
      %c0_10 = arith.constant 0 : index
      %c0_11 = arith.constant 0 : index
      %22 = vector.load %arg6[%c0_10, %c0_11] : memref<256x128xf32, #tpu.memory_space<vmem>>, vector<256x128xf32>
      tpu.vector_store %arg6[%c0_10, %c0_11], %21 {strides = array<i32>} : memref<256x128xf32, #tpu.memory_space<vmem>>, vector<256x128xf32>,
    } else {
    }
    return
  }
  func.func @transform_1(%arg0: i32, %arg1: i32) -> (i32, i32) {
    %c0_i32 = arith.constant 0 : i32
    %c0_i32_0 = arith.constant 0 : i32
    %c0_i32_1 = arith.constant 0 : i32
    return %c0_i32, %c0_i32_0 : i32, i32
  }
  func.func @transform_2(%arg0: i32, %arg1: i32) -> (i32, i32) {
    %c0_i32 = arith.constant 0 : i32
    %c0_i32_0 = arith.constant 0 : i32
    %c0_i32_1 = arith.constant 0 : i32
    return %c0_i32, %c0_i32_0 : i32, i32
  }
  func.func @transform_3(%arg0: i32, %arg1: i32) -> (i32, i32) {
    %c0_i32 = arith.constant 0 : i32
    %c0_i32_0 = arith.constant 0 : i32
    %c0_i32_1 = arith.constant 0 : i32
    return %c0_i32, %c0_i32_0 : i32, i32
  }
  func.func @transform_4(%arg0: i32, %arg1: i32) -> (i32, i32) {
    %0 = arith.muli %arg1, %arg0 : i32
    %c0_i32 = arith.constant 0 : i32
    %c0_i32_0 = arith.constant 0 : i32
    return %0, %c0_i32 : i32, i32
  }
}

</mosaic_0001>

<bundles_post_ra>
// kernel: gcn_forward.1
= control target key start
LH: loop header
LB: loop body
LE: loop exit
PB: predicated region body
PF: predicated region fallthrough
CT: control target
= control target key end

     0   :  { %s4889_s15 = smov 0   ;;  %s4891_s16 = smov 0   ;;  %s5846_s0 = inlined_call_operand.vmem [shape: bf16[512,512], index: 0, kind: input, shape index: {}]   ;;  %s5847_s1 = inlined_call_operand.vmem [shape: bf16[512,128], index: 1, kind: input, shape index: {}]   ;;  %s5848_s2 = inlined_call_operand.vmem [shape: bf16[128,128], index: 2, kind: input, shape index: {}]   ;;  %s5849_s3 = inlined_call_operand.vmem [shape: f32[1,128], index: 3, kind: input, shape index: {}]   ;;  %s5850_s4 = inlined_call_operand.vmem [shape: f32[512,128], index: 4, kind: output, shape index: {}]  }
   0x1   :  { %s4893_s17 = smov 0   ;;  %s4895_s18 = smov 0  }
   0x2   :  { %s4897_s19 = smov 0  }
   0x3 LB: > { %s23_s20 = sadd.s32 1, %s4854_s17  ;;  %s26_s21 = sadd.s32 1, %s4858_s18  ;;  %s4862_s19 = sphi %s4897_s19, %s14_s19   ;;  %s4858_s18 = sphi %s4895_s18, %s5854_s18   ;;  %s4854_s17 = sphi %s4893_s17, %s5853_s17   ;;  %s4850_s16 = sphi %s4891_s16, %s5852_s16   ;;  %s4846_s15 = sphi %s4889_s15, %s5851_s15  }
   0x4   : > { %p24_p0 = scmp.ge.s32.totalorder %s23_s20, 2  ;;  %p3295_p1 = scmp.ge.s32.totalorder %s4862_s19, 1 }
   0x5   : > { %p142_p2 = scmp.lt.s32.totalorder %s4862_s19, 5 }
   0x6   : > { %s5856_s20 = smov (%p24_p0, %s23_s20), 0  ;;  %s5858_s21 = smov (!%p24_p0, %s26_s21), %s4858_s18 }
   0x7   : > { %p143_p3 = pnand %p3295_p1, %p142_p2  ;;  %p28_p4 = scmp.ge.s32.totalorder %s5858_s21, 2 }
   0x8   : > { %s162_s22 = smul.u32 (!%p143_p3), %s4846_s15, %s4850_s16  ;;  %s3298_s23 = sshll.u32 (!%p143_p3), %s4846_s15, 8 }
   0x9   : > { %s5860_s21 = smov (%p28_p4, %s5858_s21), 0  ;;  %146 = sbr.rel (%p143_p3) target bundleno = 1306 (0x51a), region = 32 }
   0xa   : > { %p171_p5 = scmp.eq.s32.totalorder (!%p143_p3), %s4850_s16, 0  ;;  %p172_p6 = scmp.eq.s32.totalorder (!%p143_p3), %s4846_s15, 0 }
   0xb   : > { %s3296_s24 = sshll.u32 (!%p143_p3), %s162_s22, 5 }
   0xc   : > { %p164_p7 = scmp.lt.s32.totalorder (!%p143_p3), %s3296_s24, 63  ;;  %p173_p8 = pnand (!%p143_p3), %p172_p6, %p171_p5 }
   0xe   : > { %s5862_s24 = smov (!%p164_p7, %s3296_s24), 63  ;;  %176 = sbr.rel (%p173_p8) target bundleno = 151 (0x97), region = 36 }
   0xf   : > { %s3297_s25 = sshll.u32 %s5862_s24, 3 }
  0x10   : > { %s4933_s28 = scalar_lea.vmem %s5850_s4, %s3297_s25 }
  0x13   : > { %v187_v0 = vld [vmem:[%s5846_s0] sm:$0xff]  ;;  %v189_v1 = vld [vmem:[%s5846_s0 + $0x8] sm:$0xff]  ;;  %v191_v2 = vld [vmem:[%s5846_s0 + $0x10] sm:$0xff] }
  0x14   : > { %188 = vst [vmem:[#allocation4] sm:$0xff] %v187_v0  ;;  %v193_v3 = vld [vmem:[%s5846_s0 + $0x18] sm:$0xff]  ;;  %v195_v4 = vld [vmem:[%s5846_s0 + $0x20] sm:$0xff]  ;;  %v197_v5 = vld [vmem:[%s5846_s0 + $0x28] sm:$0xff] }
  0x15   : > { %190 = vst [vmem:[#allocation4 + $0x8] sm:$0xff] %v189_v1  ;;  %v199_v6 = vld [vmem:[%s5846_s0 + $0x30] sm:$0xff]  ;;  %v201_v7 = vld [vmem:[%s5846_s0 + $0x38] sm:$0xff]  ;;  %v203_v8 = vld [vmem:[%s5846_s0 + $0x40] sm:$0xff] }
  0x16   : > { %192 = vst [vmem:[#allocation4 + $0x10] sm:$0xff] %v191_v2  ;;  %v205_v9 = vld [vmem:[%s5846_s0 + $0x48] sm:$0xff]  ;;  %v207_v10 = vld [vmem:[%s5846_s0 + $0x50] sm:$0xff]  ;;  %v209_v11 = vld [vmem:[%s5846_s0 + $0x58] sm:$0xff] }
  0x17   : > { %194 = vst [vmem:[#allocation4 + $0x18] sm:$0xff] %v193_v3  ;;  %v211_v12 = vld [vmem:[%s5846_s0 + $0x60] sm:$0xff]  ;;  %v213_v13 = vld [vmem:[%s5846_s0 + $0x68] sm:$0xff]  ;;  %v215_v14 = vld [vmem:[%s5846_s0 + $0x70] sm:$0xff] }
  0x18   : > { %196 = vst [vmem:[#allocation4 + $0x20] sm:$0xff] %v195_v4  ;;  %v217_v15 = vld [vmem:[%s5846_s0 + $0x78] sm:$0xff]  ;;  %v219_v16 = vld [vmem:[%s5846_s0 + $0x80] sm:$0xff]  ;;  %v221_v17 = vld [vmem:[%s5846_s0 + $0x88] sm:$0xff] }
  0x19   : > { %198 = vst [vmem:[#allocation4 + $0x28] sm:$0xff] %v197_v5  ;;  %v223_v18 = vld [vmem:[%s5846_s0 + $0x90] sm:$0xff]  ;;  %v225_v19 = vld [vmem:[%s5846_s0 + $0x98] sm:$0xff]  ;;  %v227_v20 = vld [vmem:[%s5846_s0 + $0xa0] sm:$0xff] }
  0x1a   : > { %200 = vst [vmem:[#allocation4 + $0x30] sm:$0xff] %v199_v6  ;;  %v229_v21 = vld [vmem:[%s5846_s0 + $0xa8] sm:$0xff]  ;;  %v231_v22 = vld [vmem:[%s5846_s0 + $0xb0] sm:$0xff]  ;;  %v233_v23 = vld [vmem:[%s5846_s0 + $0xb8] sm:$0xff] }
  0x1b   : > { %202 = vst [vmem:[#allocation4 + $0x38] sm:$0xff] %v201_v7  ;;  %v235_v24 = vld [vmem:[%s5846_s0 + $0xc0] sm:$0xff]  ;;  %v237_v25 = vld [vmem:[%s5846_s0 + $0xc8] sm:$0xff]  ;;  %v239_v26 = vld [vmem:[%s5846_s0 + $0xd0] sm:$0xff] }
  0x1c   : > { %204 = vst [vmem:[#allocation4 + $0x40] sm:$0xff] %v203_v8  ;;  %v241_v27 = vld [vmem:[%s5846_s0 + $0xd8] sm:$0xff]  ;;  %v243_v28 = vld [vmem:[%s5846_s0 + $0xe0] sm:$0xff]  ;;  %v245_v29 = vld [vmem:[%s5846_s0 + $0xe8] sm:$0xff] }
  0x1d   : > { %206 = vst [vmem:[#allocation4 + $0x48] sm:$0xff] %v205_v9  ;;  %v247_v30 = vld [vmem:[%s5846_s0 + $0xf0] sm:$0xff]  ;;  %v249_v31 = vld [vmem:[%s5846_s0 + $0xf8] sm:$0xff]  ;;  %v251_v32 = vld [vmem:[%s5846_s0 + $0x100] sm:$0xff] }
  0x1e   : > { %208 = vst [vmem:[#allocation4 + $0x50] sm:$0xff] %v207_v10  ;;  %v253_v33 = vld [vmem:[%s5846_s0 + $0x108] sm:$0xff]  ;;  %v255_v34 = vld [vmem:[%s5846_s0 + $0x110] sm:$0xff]  ;;  %v257_v35 = vld [vmem:[%s5846_s0 + $0x118] sm:$0xff] }
  0x1f   : > { %210 = vst [vmem:[#allocation4 + $0x58] sm:$0xff] %v209_v11  ;;  %v259_v36 = vld [vmem:[%s5846_s0 + $0x120] sm:$0xff]  ;;  %v261_v37 = vld [vmem:[%s5846_s0 + $0x128] sm:$0xff]  ;;  %v263_v38 = vld [vmem:[%s5846_s0 + $0x130] sm:$0xff] }
  0x20   : > { %212 = vst [vmem:[#allocation4 + $0x60] sm:$0xff] %v211_v12  ;;  %v265_v39 = vld [vmem:[%s5846_s0 + $0x138] sm:$0xff]  ;;  %v267_v40 = vld [vmem:[%s5846_s0 + $0x140] sm:$0xff]  ;;  %v269_v41 = vld [vmem:[%s5846_s0 + $0x148] sm:$0xff] }
  0x21   : > { %214 = vst [vmem:[#allocation4 + $0x68] sm:$0xff] %v213_v13  ;;  %v271_v42 = vld [vmem:[%s5846_s0 + $0x150] sm:$0xff]  ;;  %v273_v43 = vld [vmem:[%s5846_s0 + $0x158] sm:$0xff]  ;;  %v275_v44 = vld [vmem:[%s5846_s0 + $0x160] sm:$0xff] }
  0x22   : > { %216 = vst [vmem:[#allocation4 + $0x70] sm:$0xff] %v215_v14  ;;  %v277_v45 = vld [vmem:[%s5846_s0 + $0x168] sm:$0xff]  ;;  %v279_v46 = vld [vmem:[%s5846_s0 + $0x170] sm:$0xff]  ;;  %v281_v47 = vld [vmem:[%s5846_s0 + $0x178] sm:$0xff] }
  0x23   : > { %218 = vst [vmem:[#allocation4 + $0x78] sm:$0xff] %v217_v15  ;;  %v283_v48 = vld [vmem:[%s5846_s0 + $0x180] sm:$0xff]  ;;  %v285_v49 = vld [vmem:[%s5846_s0 + $0x188] sm:$0xff]  ;;  %v287_v50 = vld [vmem:[%s5846_s0 + $0x190] sm:$0xff] }
  0x24   : > { %220 = vst [vmem:[#allocation4 + $0x80] sm:$0xff] %v219_v16  ;;  %v289_v51 = vld [vmem:[%s5846_s0 + $0x198] sm:$0xff]  ;;  %v291_v52 = vld [vmem:[%s5846_s0 + $0x1a0] sm:$0xff]  ;;  %v293_v53 = vld [vmem:[%s5846_s0 + $0x1a8] sm:$0xff] }
  0x25   : > { %222 = vst [vmem:[#allocation4 + $0x88] sm:$0xff] %v221_v17  ;;  %v295_v54 = vld [vmem:[%s5846_s0 + $0x1b0] sm:$0xff]  ;;  %v297_v55 = vld [vmem:[%s5846_s0 + $0x1b8] sm:$0xff]  ;;  %v299_v56 = vld [vmem:[%s5846_s0 + $0x1c0] sm:$0xff] }
  0x26   : > { %224 = vst [vmem:[#allocation4 + $0x90] sm:$0xff] %v223_v18  ;;  %v301_v57 = vld [vmem:[%s5846_s0 + $0x1c8] sm:$0xff]  ;;  %v303_v58 = vld [vmem:[%s5846_s0 + $0x1d0] sm:$0xff]  ;;  %v305_v59 = vld [vmem:[%s5846_s0 + $0x1d8] sm:$0xff] }
  0x27   : > { %226 = vst [vmem:[#allocation4 + $0x98] sm:$0xff] %v225_v19  ;;  %v307_v60 = vld [vmem:[%s5846_s0 + $0x1e0] sm:$0xff]  ;;  %v309_v61 = vld [vmem:[%s5846_s0 + $0x1e8] sm:$0xff]  ;;  %v311_v62 = vld [vmem:[%s5846_s0 + $0x1f0] sm:$0xff] }
  0x28   : > { %228 = vst [vmem:[#allocation4 + $0xa0] sm:$0xff] %v227_v20  ;;  %v313_v63 = vld [vmem:[%s5846_s0 + $0x1f8] sm:$0xff]  ;;  %v315_v0 = vld [vmem:[%s5846_s0 + $0x200] sm:$0xff]  ;;  %v317_v1 = vld [vmem:[%s5846_s0 + $0x208] sm:$0xff] }
  0x29   : > { %230 = vst [vmem:[#allocation4 + $0xa8] sm:$0xff] %v229_v21  ;;  %v319_v2 = vld [vmem:[%s5846_s0 + $0x210] sm:$0xff]  ;;  %v321_v3 = vld [vmem:[%s5846_s0 + $0x218] sm:$0xff]  ;;  %v323_v4 = vld [vmem:[%s5846_s0 + $0x220] sm:$0xff] }
  0x2a   : > { %232 = vst [vmem:[#allocation4 + $0xb0] sm:$0xff] %v231_v22  ;;  %v325_v5 = vld [vmem:[%s5846_s0 + $0x228] sm:$0xff]  ;;  %v327_v6 = vld [vmem:[%s5846_s0 + $0x230] sm:$0xff]  ;;  %v329_v7 = vld [vmem:[%s5846_s0 + $0x238] sm:$0xff] }
  0x2b   : > { %234 = vst [vmem:[#allocation4 + $0xb8] sm:$0xff] %v233_v23  ;;  %v331_v8 = vld [vmem:[%s5846_s0 + $0x240] sm:$0xff]  ;;  %v333_v9 = vld [vmem:[%s5846_s0 + $0x248] sm:$0xff]  ;;  %v335_v10 = vld [vmem:[%s5846_s0 + $0x250] sm:$0xff] }
  0x2c   : > { %236 = vst [vmem:[#allocation4 + $0xc0] sm:$0xff] %v235_v24  ;;  %v337_v11 = vld [vmem:[%s5846_s0 + $0x258] sm:$0xff]  ;;  %v339_v12 = vld [vmem:[%s5846_s0 + $0x260] sm:$0xff]  ;;  %v341_v13 = vld [vmem:[%s5846_s0 + $0x268] sm:$0xff] }
  0x2d   : > { %238 = vst [vmem:[#allocation4 + $0xc8] sm:$0xff] %v237_v25  ;;  %v343_v14 = vld [vmem:[%s5846_s0 + $0x270] sm:$0xff]  ;;  %v345_v15 = vld [vmem:[%s5846_s0 + $0x278] sm:$0xff]  ;;  %v347_v16 = vld [vmem:[%s5846_s0 + $0x280] sm:$0xff] }
  0x2e   : > { %240 = vst [vmem:[#allocation4 + $0xd0] sm:$0xff] %v239_v26  ;;  %v349_v17 = vld [vmem:[%s5846_s0 + $0x288] sm:$0xff]  ;;  %v351_v18 = vld [vmem:[%s5846_s0 + $0x290] sm:$0xff]  ;;  %v353_v19 = vld [vmem:[%s5846_s0 + $0x298] sm:$0xff] }
  0x2f   : > { %242 = vst [vmem:[#allocation4 + $0xd8] sm:$0xff] %v241_v27  ;;  %v355_v20 = vld [vmem:[%s5846_s0 + $0x2a0] sm:$0xff]  ;;  %v357_v21 = vld [vmem:[%s5846_s0 + $0x2a8] sm:$0xff]  ;;  %v359_v22 = vld [vmem:[%s5846_s0 + $0x2b0] sm:$0xff] }
  0x30   : > { %244 = vst [vmem:[#allocation4 + $0xe0] sm:$0xff] %v243_v28  ;;  %v361_v23 = vld [vmem:[%s5846_s0 + $0x2b8] sm:$0xff]  ;;  %v363_v24 = vld [vmem:[%s5846_s0 + $0x2c0] sm:$0xff]  ;;  %v365_v25 = vld [vmem:[%s5846_s0 + $0x2c8] sm:$0xff] }
  0x31   : > { %246 = vst [vmem:[#allocation4 + $0xe8] sm:$0xff] %v245_v29  ;;  %v367_v26 = vld [vmem:[%s5846_s0 + $0x2d0] sm:$0xff]  ;;  %v369_v27 = vld [vmem:[%s5846_s0 + $0x2d8] sm:$0xff]  ;;  %v371_v28 = vld [vmem:[%s5846_s0 + $0x2e0] sm:$0xff] }
  0x32   : > { %248 = vst [vmem:[#allocation4 + $0xf0] sm:$0xff] %v247_v30  ;;  %v373_v29 = vld [vmem:[%s5846_s0 + $0x2e8] sm:$0xff]  ;;  %v375_v30 = vld [vmem:[%s5846_s0 + $0x2f0] sm:$0xff] }
  0x33   : > { %250 = vst [vmem:[#allocation4 + $0xf8] sm:$0xff] %v249_v31  ;;  %v377_v31 = vld [vmem:[%s5846_s0 + $0x2f8] sm:$0xff] }
  0x34   : > { %252 = vst [vmem:[#allocation4 + $0x100] sm:$0xff] %v251_v32  ;;  %v379_v32 = vld [vmem:[%s5846_s0 + $0x300] sm:$0xff] }
  0x35   : > { %254 = vst [vmem:[#allocation4 + $0x108] sm:$0xff] %v253_v33  ;;  %v381_v33 = vld [vmem:[%s5846_s0 + $0x308] sm:$0xff] }
  0x36   : > { %256 = vst [vmem:[#allocation4 + $0x110] sm:$0xff] %v255_v34  ;;  %v383_v34 = vld [vmem:[%s5846_s0 + $0x310] sm:$0xff] }
  0x37   : > { %258 = vst [vmem:[#allocation4 + $0x118] sm:$0xff] %v257_v35  ;;  %v385_v35 = vld [vmem:[%s5846_s0 + $0x318] sm:$0xff] }
  0x38   : > { %260 = vst [vmem:[#allocation4 + $0x120] sm:$0xff] %v259_v36  ;;  %v387_v36 = vld [vmem:[%s5846_s0 + $0x320] sm:$0xff] }
  0x39   : > { %262 = vst [vmem:[#allocation4 + $0x128] sm:$0xff] %v261_v37  ;;  %v389_v37 = vld [vmem:[%s5846_s0 + $0x328] sm:$0xff] }
  0x3a   : > { %264 = vst [vmem:[#allocation4 + $0x130] sm:$0xff] %v263_v38  ;;  %v391_v38 = vld [vmem:[%s5846_s0 + $0x330] sm:$0xff] }
  0x3b   : > { %266 = vst [vmem:[#allocation4 + $0x138] sm:$0xff] %v265_v39  ;;  %v393_v39 = vld [vmem:[%s5846_s0 + $0x338] sm:$0xff] }
  0x3c   : > { %268 = vst [vmem:[#allocation4 + $0x140] sm:$0xff] %v267_v40  ;;  %v395_v40 = vld [vmem:[%s5846_s0 + $0x340] sm:$0xff] }
  0x3d   : > { %270 = vst [vmem:[#allocation4 + $0x148] sm:$0xff] %v269_v41  ;;  %v397_v41 = vld [vmem:[%s5846_s0 + $0x348] sm:$0xff] }
  0x3e   : > { %272 = vst [vmem:[#allocation4 + $0x150] sm:$0xff] %v271_v42  ;;  %v399_v42 = vld [vmem:[%s5846_s0 + $0x350] sm:$0xff] }
  0x3f   : > { %274 = vst [vmem:[#allocation4 + $0x158] sm:$0xff] %v273_v43  ;;  %v401_v43 = vld [vmem:[%s5846_s0 + $0x358] sm:$0xff] }
  0x40   : > { %276 = vst [vmem:[#allocation4 + $0x160] sm:$0xff] %v275_v44  ;;  %v403_v44 = vld [vmem:[%s5846_s0 + $0x360] sm:$0xff] }
  0x41   : > { %278 = vst [vmem:[#allocation4 + $0x168] sm:$0xff] %v277_v45  ;;  %v405_v45 = vld [vmem:[%s5846_s0 + $0x368] sm:$0xff] }
  0x42   : > { %280 = vst [vmem:[#allocation4 + $0x170] sm:$0xff] %v279_v46  ;;  %v407_v46 = vld [vmem:[%s5846_s0 + $0x370] sm:$0xff] }
  0x43   : > { %282 = vst [vmem:[#allocation4 + $0x178] sm:$0xff] %v281_v47  ;;  %v409_v47 = vld [vmem:[%s5846_s0 + $0x378] sm:$0xff] }
  0x44   : > { %284 = vst [vmem:[#allocation4 + $0x180] sm:$0xff] %v283_v48  ;;  %v411_v48 = vld [vmem:[%s5846_s0 + $0x380] sm:$0xff] }
  0x45   : > { %286 = vst [vmem:[#allocation4 + $0x188] sm:$0xff] %v285_v49  ;;  %v413_v49 = vld [vmem:[%s5846_s0 + $0x388] sm:$0xff] }
  0x46   : > { %288 = vst [vmem:[#allocation4 + $0x190] sm:$0xff] %v287_v50  ;;  %v415_v50 = vld [vmem:[%s5846_s0 + $0x390] sm:$0xff] }
  0x47   : > { %290 = vst [vmem:[#allocation4 + $0x198] sm:$0xff] %v289_v51  ;;  %v417_v51 = vld [vmem:[%s5846_s0 + $0x398] sm:$0xff] }
  0x48   : > { %292 = vst [vmem:[#allocation4 + $0x1a0] sm:$0xff] %v291_v52  ;;  %v419_v52 = vld [vmem:[%s5846_s0 + $0x3a0] sm:$0xff] }
  0x49   : > { %294 = vst [vmem:[#allocation4 + $0x1a8] sm:$0xff] %v293_v53  ;;  %v421_v53 = vld [vmem:[%s5846_s0 + $0x3a8] sm:$0xff] }
  0x4a   : > { %296 = vst [vmem:[#allocation4 + $0x1b0] sm:$0xff] %v295_v54  ;;  %v423_v54 = vld [vmem:[%s5846_s0 + $0x3b0] sm:$0xff] }
  0x4b   : > { %298 = vst [vmem:[#allocation4 + $0x1b8] sm:$0xff] %v297_v55  ;;  %v425_v55 = vld [vmem:[%s5846_s0 + $0x3b8] sm:$0xff] }
  0x4c   : > { %300 = vst [vmem:[#allocation4 + $0x1c0] sm:$0xff] %v299_v56  ;;  %v427_v56 = vld [vmem:[%s5846_s0 + $0x3c0] sm:$0xff] }
  0x4d   : > { %302 = vst [vmem:[#allocation4 + $0x1c8] sm:$0xff] %v301_v57  ;;  %v429_v57 = vld [vmem:[%s5846_s0 + $0x3c8] sm:$0xff] }
  0x4e   : > { %304 = vst [vmem:[#allocation4 + $0x1d0] sm:$0xff] %v303_v58  ;;  %v431_v58 = vld [vmem:[%s5846_s0 + $0x3d0] sm:$0xff] }
  0x4f   : > { %306 = vst [vmem:[#allocation4 + $0x1d8] sm:$0xff] %v305_v59  ;;  %v433_v59 = vld [vmem:[%s5846_s0 + $0x3d8] sm:$0xff] }
  0x50   : > { %308 = vst [vmem:[#allocation4 + $0x1e0] sm:$0xff] %v307_v60  ;;  %v435_v60 = vld [vmem:[%s5846_s0 + $0x3e0] sm:$0xff] }
  0x51   : > { %310 = vst [vmem:[#allocation4 + $0x1e8] sm:$0xff] %v309_v61  ;;  %v437_v61 = vld [vmem:[%s5846_s0 + $0x3e8] sm:$0xff] }
  0x52   : > { %312 = vst [vmem:[#allocation4 + $0x1f0] sm:$0xff] %v311_v62  ;;  %v439_v62 = vld [vmem:[%s5846_s0 + $0x3f0] sm:$0xff] }
  0x53   : > { %314 = vst [vmem:[#allocation4 + $0x1f8] sm:$0xff] %v313_v63  ;;  %v441_v63 = vld [vmem:[%s5846_s0 + $0x3f8] sm:$0xff] }
  0x54   : > { %316 = vst [vmem:[#allocation4 + $0x200] sm:$0xff] %v315_v0 }
  0x55   : > { %318 = vst [vmem:[#allocation4 + $0x208] sm:$0xff] %v317_v1 }
  0x56   : > { %320 = vst [vmem:[#allocation4 + $0x210] sm:$0xff] %v319_v2 }
  0x57   : > { %322 = vst [vmem:[#allocation4 + $0x218] sm:$0xff] %v321_v3 }
  0x58   : > { %324 = vst [vmem:[#allocation4 + $0x220] sm:$0xff] %v323_v4 }
  0x59   : > { %326 = vst [vmem:[#allocation4 + $0x228] sm:$0xff] %v325_v5 }
  0x5a   : > { %328 = vst [vmem:[#allocation4 + $0x230] sm:$0xff] %v327_v6 }
  0x5b   : > { %330 = vst [vmem:[#allocation4 + $0x238] sm:$0xff] %v329_v7 }
  0x5c   : > { %332 = vst [vmem:[#allocation4 + $0x240] sm:$0xff] %v331_v8 }
  0x5d   : > { %334 = vst [vmem:[#allocation4 + $0x248] sm:$0xff] %v333_v9 }
  0x5e   : > { %336 = vst [vmem:[#allocation4 + $0x250] sm:$0xff] %v335_v10 }
  0x5f   : > { %338 = vst [vmem:[#allocation4 + $0x258] sm:$0xff] %v337_v11 }
  0x60   : > { %340 = vst [vmem:[#allocation4 + $0x260] sm:$0xff] %v339_v12 }
  0x61   : > { %342 = vst [vmem:[#allocation4 + $0x268] sm:$0xff] %v341_v13 }
  0x62   : > { %344 = vst [vmem:[#allocation4 + $0x270] sm:$0xff] %v343_v14 }
  0x63   : > { %346 = vst [vmem:[#allocation4 + $0x278] sm:$0xff] %v345_v15 }
  0x64   : > { %348 = vst [vmem:[#allocation4 + $0x280] sm:$0xff] %v347_v16 }
  0x65   : > { %350 = vst [vmem:[#allocation4 + $0x288] sm:$0xff] %v349_v17 }
  0x66   : > { %352 = vst [vmem:[#allocation4 + $0x290] sm:$0xff] %v351_v18 }
  0x67   : > { %354 = vst [vmem:[#allocation4 + $0x298] sm:$0xff] %v353_v19 }
  0x68   : > { %356 = vst [vmem:[#allocation4 + $0x2a0] sm:$0xff] %v355_v20 }
  0x69   : > { %358 = vst [vmem:[#allocation4 + $0x2a8] sm:$0xff] %v357_v21 }
  0x6a   : > { %360 = vst [vmem:[#allocation4 + $0x2b0] sm:$0xff] %v359_v22 }
  0x6b   : > { %362 = vst [vmem:[#allocation4 + $0x2b8] sm:$0xff] %v361_v23 }
  0x6c   : > { %364 = vst [vmem:[#allocation4 + $0x2c0] sm:$0xff] %v363_v24 }
  0x6d   : > { %366 = vst [vmem:[#allocation4 + $0x2c8] sm:$0xff] %v365_v25 }
  0x6e   : > { %368 = vst [vmem:[#allocation4 + $0x2d0] sm:$0xff] %v367_v26 }
  0x6f   : > { %370 = vst [vmem:[#allocation4 + $0x2d8] sm:$0xff] %v369_v27 }
  0x70   : > { %372 = vst [vmem:[#allocation4 + $0x2e0] sm:$0xff] %v371_v28 }
  0x71   : > { %374 = vst [vmem:[#allocation4 + $0x2e8] sm:$0xff] %v373_v29 }
  0x72   : > { %376 = vst [vmem:[#allocation4 + $0x2f0] sm:$0xff] %v375_v30 }
  0x73   : > { %378 = vst [vmem:[#allocation4 + $0x2f8] sm:$0xff] %v377_v31 }
  0x74   : > { %380 = vst [vmem:[#allocation4 + $0x300] sm:$0xff] %v379_v32 }
  0x75   : > { %382 = vst [vmem:[#allocation4 + $0x308] sm:$0xff] %v381_v33 }
  0x76   : > { %384 = vst [vmem:[#allocation4 + $0x310] sm:$0xff] %v383_v34 }
  0x77   : > { %386 = vst [vmem:[#allocation4 + $0x318] sm:$0xff] %v385_v35 }
  0x78   : > { %388 = vst [vmem:[#allocation4 + $0x320] sm:$0xff] %v387_v36 }
  0x79   : > { %390 = vst [vmem:[#allocation4 + $0x328] sm:$0xff] %v389_v37 }
  0x7a   : > { %392 = vst [vmem:[#allocation4 + $0x330] sm:$0xff] %v391_v38 }
  0x7b   : > { %394 = vst [vmem:[#allocation4 + $0x338] sm:$0xff] %v393_v39 }
  0x7c   : > { %396 = vst [vmem:[#allocation4 + $0x340] sm:$0xff] %v395_v40 }
  0x7d   : > { %398 = vst [vmem:[#allocation4 + $0x348] sm:$0xff] %v397_v41 }
  0x7e   : > { %400 = vst [vmem:[#allocation4 + $0x350] sm:$0xff] %v399_v42 }
  0x7f   : > { %402 = vst [vmem:[#allocation4 + $0x358] sm:$0xff] %v401_v43 }
  0x80   : > { %404 = vst [vmem:[#allocation4 + $0x360] sm:$0xff] %v403_v44 }
  0x81   : > { %406 = vst [vmem:[#allocation4 + $0x368] sm:$0xff] %v405_v45 }
  0x82   : > { %408 = vst [vmem:[#allocation4 + $0x370] sm:$0xff] %v407_v46 }
  0x83   : > { %410 = vst [vmem:[#allocation4 + $0x378] sm:$0xff] %v409_v47 }
  0x84   : > { %412 = vst [vmem:[#allocation4 + $0x380] sm:$0xff] %v411_v48 }
  0x85   : > { %414 = vst [vmem:[#allocation4 + $0x388] sm:$0xff] %v413_v49 }
  0x86   : > { %416 = vst [vmem:[#allocation4 + $0x390] sm:$0xff] %v415_v50 }
  0x87   : > { %418 = vst [vmem:[#allocation4 + $0x398] sm:$0xff] %v417_v51 }
  0x88   : > { %420 = vst [vmem:[#allocation4 + $0x3a0] sm:$0xff] %v419_v52 }
  0x89   : > { %422 = vst [vmem:[#allocation4 + $0x3a8] sm:$0xff] %v421_v53 }
  0x8a   : > { %424 = vst [vmem:[#allocation4 + $0x3b0] sm:$0xff] %v423_v54 }
  0x8b   : > { %426 = vst [vmem:[#allocation4 + $0x3b8] sm:$0xff] %v425_v55 }
  0x8c   : > { %428 = vst [vmem:[#allocation4 + $0x3c0] sm:$0xff] %v427_v56 }
  0x8d   : > { %430 = vst [vmem:[#allocation4 + $0x3c8] sm:$0xff] %v429_v57 }
  0x8e   : > { %432 = vst [vmem:[#allocation4 + $0x3d0] sm:$0xff] %v431_v58 }
  0x8f   : > { %434 = vst [vmem:[#allocation4 + $0x3d8] sm:$0xff] %v433_v59 }
  0x90   : > { %436 = vst [vmem:[#allocation4 + $0x3e0] sm:$0xff] %v435_v60 }
  0x91   : > { %438 = vst [vmem:[#allocation4 + $0x3e8] sm:$0xff] %v437_v61 }
  0x92   : > { %440 = vst [vmem:[#allocation4 + $0x3f0] sm:$0xff] %v439_v62 }
  0x93   : > { %442 = vst [vmem:[#allocation4 + $0x3f8] sm:$0xff] %v441_v63 }
  0x94   : > { %448 = vsyncadd [#allocation5], 16384 }
  0x95   : > { %4842 = dma.done.wait [#allocation5], 16384 }
  0x96   : > { %4843 = vsyncadd [#allocation5], 4294950912 }
  0x97 PF: > { %p3299_p9 = scmp.ne.s32.totalorder %s4850_s16, 0 }
  0x98   : > { %s5382_s10 = sshra.s32 (!%p3299_p9), %s3298_s23, 3 }
  0x99   : > { %455 = sbr.rel (%p3299_p9) target bundleno = 581 (0x245), region = 59  ;;  %s4237_s27 = sshll.u32 (!%p3299_p9), %s5382_s10, 4 }
  0x9a   : > { %s5421_s30 = scalar_lea.vmem (!%p3299_p9), [#allocation4], %s4237_s27  ;;  %s3686_s27 = sshll.u32 (!%p3299_p9), %s5382_s10, 2 }
  0x9b   : > { %s5504_s5 = scalar_lea.vmem (!%p3299_p9), [#allocation2], %s3686_s27 }
  0x9e   : > { %v4309_v0 = vld [vmem:[%s5847_s1 + $0x38] sm:$0xff]  ;;  %v4308_v4 = vld [vmem:[%s5847_s1 + $0x30] sm:$0xff]  ;;  %v4307_v8 = vld [vmem:[%s5847_s1 + $0x28] sm:$0xff] }
  0x9f   : > { %v4317_v1 = vld [vmem:[%s5847_s1 + $0x78] sm:$0xff]  ;;  %1101 = vmatpush.bf16.msra.mxu0 %v4309_v0  ;;  %v4316_v5 = vld [vmem:[%s5847_s1 + $0x70] sm:$0xff]  ;;  %v4315_v9 = vld [vmem:[%s5847_s1 + $0x68] sm:$0xff] }
  0xa0   : > { %v4325_v2 = vld [vmem:[%s5847_s1 + $0xb8] sm:$0xff]  ;;  %1190 = vmatpush.bf16.msra.mxu1 %v4317_v1  ;;  %v4324_v6 = vld [vmem:[%s5847_s1 + $0xb0] sm:$0xff]  ;;  %v4323_v10 = vld [vmem:[%s5847_s1 + $0xa8] sm:$0xff] }
  0xa1   : > { %v4333_v3 = vld [vmem:[%s5847_s1 + $0xf8] sm:$0xff]  ;;  %1279 = vmatpush.bf16.msra.mxu2 %v4325_v2  ;;  %v4332_v7 = vld [vmem:[%s5847_s1 + $0xf0] sm:$0xff]  ;;  %v4331_v11 = vld [vmem:[%s5847_s1 + $0xe8] sm:$0xff] }
  0xa2   : > { %1368 = vmatpush.bf16.msra.mxu3 %v4333_v3  ;;  %v4306_v12 = vld [vmem:[%s5847_s1 + $0x20] sm:$0xff]  ;;  %v4305_v16 = vld [vmem:[%s5847_s1 + $0x18] sm:$0xff]  ;;  %v4304_v20 = vld [vmem:[%s5847_s1 + $0x10] sm:$0xff] }
  0xa3   : > { %1102 = vmatpush.bf16.msra.mxu0 %v4308_v4  ;;  %v4314_v13 = vld [vmem:[%s5847_s1 + $0x60] sm:$0xff]  ;;  %v4313_v17 = vld [vmem:[%s5847_s1 + $0x58] sm:$0xff]  ;;  %v4312_v21 = vld [vmem:[%s5847_s1 + $0x50] sm:$0xff] }
  0xa4   : > { %1191 = vmatpush.bf16.msra.mxu1 %v4316_v5  ;;  %v4322_v14 = vld [vmem:[%s5847_s1 + $0xa0] sm:$0xff]  ;;  %v4321_v18 = vld [vmem:[%s5847_s1 + $0x98] sm:$0xff]  ;;  %v4320_v22 = vld [vmem:[%s5847_s1 + $0x90] sm:$0xff] }
  0xa5   : > { %1280 = vmatpush.bf16.msra.mxu2 %v4324_v6  ;;  %v4330_v15 = vld [vmem:[%s5847_s1 + $0xe0] sm:$0xff]  ;;  %v4329_v19 = vld [vmem:[%s5847_s1 + $0xd8] sm:$0xff]  ;;  %v4328_v23 = vld [vmem:[%s5847_s1 + $0xd0] sm:$0xff] }
  0xa6   : > { %1369 = vmatpush.bf16.msra.mxu3 %v4332_v7  ;;  %v4303_v24 = vld [vmem:[%s5847_s1 + $0x8] sm:$0xff]  ;;  %v4302_v28 = vld [vmem:[%s5847_s1] sm:$0xff]  ;;  %v4240_v33 = vld [vmem:[%s5421_s30 + $0xc] sm:$0xf0] }
  0xa7   : > { %1103 = vmatpush.bf16.msra.mxu0 %v4307_v8  ;;  %v4311_v25 = vld [vmem:[%s5847_s1 + $0x48] sm:$0xff]  ;;  %v4310_v29 = vld [vmem:[%s5847_s1 + $0x40] sm:$0xff]  ;;  %v3306_v35 = vld [vmem:[%s5421_s30 + $0x10] sm:$0xf0] }
  0xa8   : > { %1192 = vmatpush.bf16.msra.mxu1 %v4315_v9  ;;  %v4319_v26 = vld [vmem:[%s5847_s1 + $0x88] sm:$0xff]  ;;  %v4318_v30 = vld [vmem:[%s5847_s1 + $0x80] sm:$0xff]  ;;  %v4241_v37 = vld [vmem:[%s5421_s30 + $0x14] sm:$0xf0] }
  0xa9   : > { %1281 = vmatpush.bf16.msra.mxu2 %v4323_v10  ;;  %v4327_v27 = vld [vmem:[%s5847_s1 + $0xc8] sm:$0xff]  ;;  %v4326_v31 = vld [vmem:[%s5847_s1 + $0xc0] sm:$0xff]  ;;  %v3314_v39 = vld [vmem:[%s5421_s30 + $0x18] sm:$0xf0] }
  0xaa   : > { %1370 = vmatpush.bf16.msra.mxu3 %v4331_v11  ;;  %v3304_v32 = vld [vmem:[%s5421_s30] sm:$0xf]  ;;  %v4238_v34 = vld [vmem:[%s5421_s30 + $0x4] sm:$0xf]  ;;  %v3312_v36 = vld [vmem:[%s5421_s30 + $0x8] sm:$0xf] }
  0xab   : > { %1104 = vmatpush.bf16.msra.mxu0 %v4306_v12  ;;  %v4239_v38 = vld [vmem:[%s5421_s30 + $0xc] sm:$0xf]  ;;  %v3305_v40 = vor.u32 %v4240_v33, %v3304_v32  ;;  %v3309_v41 = vor.u32 %v4238_v34, %v3306_v35  ;;  %v3313_v42 = vor.u32 %v4241_v37, %v3312_v36  ;;  %v3320_v44 = vld [vmem:[%s5421_s30 + $0x20] sm:$0xf]  ;;  %v4244_v45 = vld [vmem:[%s5421_s30 + $0x2c] sm:$0xf0] }
  0xac   : > { %1193 = vmatpush.bf16.msra.mxu1 %v4314_v13  ;;  %v3317_v43 = vor.u32 %v4239_v38, %v3314_v39  ;;  %v4242_v46 = vld [vmem:[%s5421_s30 + $0x24] sm:$0xf]  ;;  %v3322_v47 = vld [vmem:[%s5421_s30 + $0x30] sm:$0xf0]  ;;  %v3328_v48 = vld [vmem:[%s5421_s30 + $0x28] sm:$0xf]  ;;  %v3321_v52 = vor.u32 %v4244_v45, %v3320_v44 }
  0xad   : > { %1282 = vmatpush.bf16.msra.mxu2 %v4322_v14  ;;  %v4245_v49 = vld [vmem:[%s5421_s30 + $0x34] sm:$0xf0]  ;;  %v4243_v50 = vld [vmem:[%s5421_s30 + $0x2c] sm:$0xf]  ;;  %v3330_v51 = vld [vmem:[%s5421_s30 + $0x38] sm:$0xf0]  ;;  %v3325_v53 = vor.u32 %v4242_v46, %v3322_v47 }
  0xae   : > { %1371 = vmatpush.bf16.msra.mxu3 %v4330_v15  ;;  %v3329_v54 = vor.u32 %v4245_v49, %v3328_v48  ;;  %v3333_v55 = vor.u32 %v4243_v50, %v3330_v51  ;;  %v3336_v56 = vld [vmem:[%s5421_s30 + $0x40] sm:$0xf]  ;;  %v4248_v57 = vld [vmem:[%s5421_s30 + $0x4c] sm:$0xf0]  ;;  %v4246_v58 = vld [vmem:[%s5421_s30 + $0x44] sm:$0xf] }
  0xaf   : > { %1105 = vmatpush.bf16.msra.mxu0 %v4305_v16  ;;  %v3338_v59 = vld [vmem:[%s5421_s30 + $0x50] sm:$0xf0]  ;;  %v3344_v60 = vld [vmem:[%s5421_s30 + $0x48] sm:$0xf]  ;;  %v4249_v61 = vld [vmem:[%s5421_s30 + $0x54] sm:$0xf0]  ;;  %v3337_v0 = vor.u32 %v4248_v57, %v3336_v56 }
  0xb0   : > { %1194 = vmatpush.bf16.msra.mxu1 %v4313_v17  ;;  %v4247_v62 = vld [vmem:[%s5421_s30 + $0x4c] sm:$0xf]  ;;  %v3346_v63 = vld [vmem:[%s5421_s30 + $0x58] sm:$0xf0]  ;;  %v3341_v1 = vor.u32 %v4246_v58, %v3338_v59  ;;  %v3345_v2 = vor.u32 %v4249_v61, %v3344_v60  ;;  %v3352_v4 = vld [vmem:[%s5421_s30 + $0x60] sm:$0xf] }
  0xb1   : > { %1283 = vmatpush.bf16.msra.mxu2 %v4321_v18  ;;  %v3349_v3 = vor.u32 %v4247_v62, %v3346_v63  ;;  %v4252_v5 = vld [vmem:[%s5421_s30 + $0x6c] sm:$0xf0]  ;;  %v4250_v6 = vld [vmem:[%s5421_s30 + $0x64] sm:$0xf]  ;;  %v3354_v7 = vld [vmem:[%s5421_s30 + $0x70] sm:$0xf0] }
  0xb2   : > { %1372 = vmatpush.bf16.msra.mxu3 %v4329_v19  ;;  %v3360_v8 = vld [vmem:[%s5421_s30 + $0x68] sm:$0xf]  ;;  %v4253_v9 = vld [vmem:[%s5421_s30 + $0x74] sm:$0xf0]  ;;  %v4251_v10 = vld [vmem:[%s5421_s30 + $0x6c] sm:$0xf]  ;;  %v3353_v12 = vor.u32 %v4252_v5, %v3352_v4  ;;  %v3357_v13 = vor.u32 %v4250_v6, %v3354_v7 }
  0xb3   : > { %1106 = vmatpush.bf16.msra.mxu0 %v4304_v20  ;;  %v3362_v11 = vld [vmem:[%s5421_s30 + $0x78] sm:$0xf0]  ;;  %v3361_v14 = vor.u32 %v4253_v9, %v3360_v8  ;;  %v3368_v16 = vld [vmem:[%s5421_s30 + $0x80] sm:$0xf]  ;;  %v4256_v17 = vld [vmem:[%s5421_s30 + $0x8c] sm:$0xf0] }
  0xb4   : > { %1195 = vmatpush.bf16.msra.mxu1 %v4312_v21  ;;  %v3365_v15 = vor.u32 %v4251_v10, %v3362_v11  ;;  %v4254_v18 = vld [vmem:[%s5421_s30 + $0x84] sm:$0xf]  ;;  %v3370_v19 = vld [vmem:[%s5421_s30 + $0x90] sm:$0xf0]  ;;  %v3376_v20 = vld [vmem:[%s5421_s30 + $0x88] sm:$0xf] }
  0xb5   : > { %1284 = vmatpush.bf16.msra.mxu2 %v4320_v22  ;;  %v4257_v21 = vld [vmem:[%s5421_s30 + $0x94] sm:$0xf0]  ;;  %v4255_v22 = vld [vmem:[%s5421_s30 + $0x8c] sm:$0xf]  ;;  %v3392_v32 = vld [vmem:[%s5421_s30 + $0xa8] sm:$0xf] }
  0xb6   : > { %1373 = vmatpush.bf16.msra.mxu3 %v4328_v23  ;;  %v3378_v23 = vld [vmem:[%s5421_s30 + $0x98] sm:$0xf0]  ;;  %v4261_v33 = vld [vmem:[%s5421_s30 + $0xb4] sm:$0xf0]  ;;  %v4259_v34 = vld [vmem:[%s5421_s30 + $0xac] sm:$0xf] }
  0xb7   : > { %1107 = vmatpush.bf16.msra.mxu0 %v4303_v24  ;;  %v3369_v24 = vor.u32 %v4256_v17, %v3368_v16  ;;  %v3394_v35 = vld [vmem:[%s5421_s30 + $0xb8] sm:$0xf0]  ;;  %v3393_v38 = vor.u32 %v4261_v33, %v3392_v32  ;;  %v3408_v44 = vld [vmem:[%s5421_s30 + $0xc8] sm:$0xf]  ;;  %v4265_v45 = vld [vmem:[%s5421_s30 + $0xd4] sm:$0xf0] }
  0xb8   : > { %1196 = vmatpush.bf16.msra.mxu1 %v4311_v25  ;;  %v3373_v25 = vor.u32 %v4254_v18, %v3370_v19  ;;  %v3397_v39 = vor.u32 %v4259_v34, %v3394_v35  ;;  %v4263_v46 = vld [vmem:[%s5421_s30 + $0xcc] sm:$0xf]  ;;  %v3410_v47 = vld [vmem:[%s5421_s30 + $0xd8] sm:$0xf0]  ;;  %v3409_v50 = vor.u32 %v4265_v45, %v3408_v44  ;;  %v3424_v56 = vld [vmem:[%s5421_s30 + $0xe8] sm:$0xf] }
  0xb9   : > { %1285 = vmatpush.bf16.msra.mxu2 %v4319_v26  ;;  %v3377_v26 = vor.u32 %v4257_v21, %v3376_v20  ;;  %v3413_v51 = vor.u32 %v4263_v46, %v3410_v47  ;;  %v4269_v57 = vld [vmem:[%s5421_s30 + $0xf4] sm:$0xf0]  ;;  %v4267_v58 = vld [vmem:[%s5421_s30 + $0xec] sm:$0xf]  ;;  %v3426_v59 = vld [vmem:[%s5421_s30 + $0xf8] sm:$0xf0] }
  0xba   : > { %1374 = vmatpush.bf16.msra.mxu3 %v4327_v27  ;;  %v3381_v27 = vor.u32 %v4255_v22, %v3378_v23  ;;  %v3425_v62 = vor.u32 %v4269_v57, %v3424_v56  ;;  %v3429_v63 = vor.u32 %v4267_v58, %v3426_v59  ;;  %v3440_v4 = vld [vmem:[%s5421_s30 + $0x108] sm:$0xf]  ;;  %v4273_v5 = vld [vmem:[%s5421_s30 + $0x114] sm:$0xf0]  ;;  %v4271_v6 = vld [vmem:[%s5421_s30 + $0x10c] sm:$0xf] }
  0xbb   : > { %1108 = vmatpush.bf16.msra.mxu0 %v4302_v28  ;;  %v3384_v28 = vld [vmem:[%s5421_s30 + $0xa0] sm:$0xf]  ;;  %v3442_v7 = vld [vmem:[%s5421_s30 + $0x118] sm:$0xf0]  ;;  %v4276_v20 = vld [vmem:[%s5421_s30 + $0x12c] sm:$0xf0] }
  0xbc   : > { %1197 = vmatpush.bf16.msra.mxu1 %v4310_v29  ;;  %v4260_v29 = vld [vmem:[%s5421_s30 + $0xac] sm:$0xf0]  ;;  %v3448_v19 = vld [vmem:[%s5421_s30 + $0x120] sm:$0xf]  ;;  %v4274_v22 = vld [vmem:[%s5421_s30 + $0x124] sm:$0xf] }
  0xbd   : > { %1286 = vmatpush.bf16.msra.mxu2 %v4318_v30  ;;  %v4258_v30 = vld [vmem:[%s5421_s30 + $0xa4] sm:$0xf]  ;;  %v3385_v36 = vor.u32 %v4260_v29, %v3384_v28  ;;  %v3450_v23 = vld [vmem:[%s5421_s30 + $0x130] sm:$0xf0]  ;;  %v3474_v56 = vld [vmem:[%s5421_s30 + $0x158] sm:$0xf0] }
  0xbe   : > { %1375 = vmatpush.bf16.msra.mxu3 %v4326_v31  ;;  %1109 = vmatmul.bf16.vlgmr.msra.gmra.mxu0 %v3305_v40  ;;  %v3386_v31 = vld [vmem:[%s5421_s30 + $0xb0] sm:$0xf0]  ;;  %v3400_v40 = vld [vmem:[%s5421_s30 + $0xc0] sm:$0xf]  ;;  %v3453_v32 = vor.u32 %v4274_v22, %v3450_v23 }
  0xbf   : > { %1198 = vmatmul.bf16.vlgmr.msra.gmra.mxu1 %v3309_v41  ;;  %v3389_v37 = vor.u32 %v4258_v30, %v3386_v31  ;;  %v4264_v41 = vld [vmem:[%s5421_s30 + $0xcc] sm:$0xf0]  ;;  %v3449_v31 = vor.u32 %v4276_v20, %v3448_v19  ;;  %v4285_v19 = vld [vmem:[%s5421_s30 + $0x174] sm:$0xf0]  ;;  %v4283_v20 = vld [vmem:[%s5421_s30 + $0x16c] sm:$0xf] }
  0xc0   : > { %1287 = vmatmul.bf16.vlgmr.msra.gmra.mxu2 %v3313_v42  ;;  %v4262_v42 = vld [vmem:[%s5421_s30 + $0xc4] sm:$0xf]  ;;  %v3401_v48 = vor.u32 %v4264_v41, %v3400_v40 }
  0xc1   : > { %1376 = vmatmul.bf16.vlgmr.msra.gmra.mxu3 %v3317_v43  ;;  %v3402_v43 = vld [vmem:[%s5421_s30 + $0xd0] sm:$0xf0] }
  0xc2   : > { %v3405_v49 = vor.u32 %v4262_v42, %v3402_v43 }
  0xce   : > { %1114 = vmatmul.bf16.gmra.mxu0 %v3321_v52  ;;  %v3416_v52 = vld [vmem:[%s5421_s30 + $0xe0] sm:$0xf] }
  0xcf   : > { %1203 = vmatmul.bf16.gmra.mxu1 %v3325_v53  ;;  %v4268_v53 = vld [vmem:[%s5421_s30 + $0xec] sm:$0xf0] }
  0xd0   : > { %1292 = vmatmul.bf16.gmra.mxu2 %v3329_v54  ;;  %v4266_v54 = vld [vmem:[%s5421_s30 + $0xe4] sm:$0xf]  ;;  %v3417_v60 = vor.u32 %v4268_v53, %v3416_v52  ;;  %v3466_v52 = vld [vmem:[%s5421_s30 + $0x150] sm:$0xf0]  ;;  %v3472_v53 = vld [vmem:[%s5421_s30 + $0x148] sm:$0xf] }
  0xd1   : > { %1381 = vmatmul.bf16.gmra.mxu3 %v3333_v55  ;;  %v3418_v55 = vld [vmem:[%s5421_s30 + $0xf0] sm:$0xf0] }
  0xd2   : > { %v3421_v61 = vor.u32 %v4266_v54, %v3418_v55  ;;  %v4281_v54 = vld [vmem:[%s5421_s30 + $0x154] sm:$0xf0]  ;;  %v4279_v55 = vld [vmem:[%s5421_s30 + $0x14c] sm:$0xf] }
  0xde   : > { %1119 = vmatmul.bf16.gmra.mxu0 %v3337_v0  ;;  %v3432_v0 = vld [vmem:[%s5421_s30 + $0x100] sm:$0xf] }
  0xdf   : > { %1208 = vmatmul.bf16.gmra.mxu1 %v3341_v1  ;;  %v4272_v1 = vld [vmem:[%s5421_s30 + $0x10c] sm:$0xf0] }
  0xe0   : > { %1297 = vmatmul.bf16.gmra.mxu2 %v3345_v2  ;;  %v4270_v2 = vld [vmem:[%s5421_s30 + $0x104] sm:$0xf]  ;;  %v3433_v8 = vor.u32 %v4272_v1, %v3432_v0 }
  0xe1   : > { %1386 = vmatmul.bf16.gmra.mxu3 %v3349_v3  ;;  %v3434_v3 = vld [vmem:[%s5421_s30 + $0x110] sm:$0xf0] }
  0xe2   : > { %v3437_v9 = vor.u32 %v4270_v2, %v3434_v3  ;;  %v3473_v2 = vor.u32 %v4281_v54, %v3472_v53  ;;  %v3477_v3 = vor.u32 %v4279_v55, %v3474_v56 }
  0xee   : > { %1124 = vmatmul.bf16.gmra.mxu0 %v3353_v12  ;;  %v3441_v12 = vor.u32 %v4273_v5, %v3440_v4 }
  0xef   : > { %1213 = vmatmul.bf16.gmra.mxu1 %v3357_v13  ;;  %v3445_v13 = vor.u32 %v4271_v6, %v3442_v7 }
  0xf0   : > { %1302 = vmatmul.bf16.gmra.mxu2 %v3361_v14 }
  0xf1   : > { %1391 = vmatmul.bf16.gmra.mxu3 %v3365_v15 }
  0xfe   : > { %1129 = vmatmul.bf16.gmra.mxu0 %v3369_v24  ;;  %v3456_v24 = vld [vmem:[%s5421_s30 + $0x128] sm:$0xf] }
  0xff   : > { %1218 = vmatmul.bf16.gmra.mxu1 %v3373_v25  ;;  %v4277_v25 = vld [vmem:[%s5421_s30 + $0x134] sm:$0xf0] }
 0x100   : > { %1307 = vmatmul.bf16.gmra.mxu2 %v3377_v26  ;;  %v4275_v26 = vld [vmem:[%s5421_s30 + $0x12c] sm:$0xf] }
 0x101   : > { %1396 = vmatmul.bf16.gmra.mxu3 %v3381_v27  ;;  %v3458_v27 = vld [vmem:[%s5421_s30 + $0x138] sm:$0xf0] }
 0x10e   : > { %1134 = vmatmul.bf16.gmra.mxu0 %v3385_v36 }
 0x10f   : > { %1223 = vmatmul.bf16.gmra.mxu1 %v3389_v37  ;;  %v3457_v37 = vor.u32 %v4277_v25, %v3456_v24 }
 0x110   : > { %1312 = vmatmul.bf16.gmra.mxu2 %v3393_v38  ;;  %v3461_v38 = vor.u32 %v4275_v26, %v3458_v27 }
 0x111   : > { %1401 = vmatmul.bf16.gmra.mxu3 %v3397_v39 }
 0x11e   : > { %1139 = vmatmul.bf16.gmra.mxu0 %v3401_v48  ;;  %v3464_v48 = vld [vmem:[%s5421_s30 + $0x140] sm:$0xf] }
 0x11f   : > { %1228 = vmatmul.bf16.gmra.mxu1 %v3405_v49  ;;  %v4280_v49 = vld [vmem:[%s5421_s30 + $0x14c] sm:$0xf0] }
 0x120   : > { %1317 = vmatmul.bf16.gmra.mxu2 %v3409_v50 }
 0x121   : > { %1406 = vmatmul.bf16.gmra.mxu3 %v3413_v51  ;;  %v4278_v51 = vld [vmem:[%s5421_s30 + $0x144] sm:$0xf] }
 0x12e   : > { %1144 = vmatmul.bf16.gmra.mxu0 %v3417_v60  ;;  %v3465_v60 = vor.u32 %v4280_v49, %v3464_v48  ;;  %v4289_v48 = vld [vmem:[%s5421_s30 + $0x194] sm:$0xf0]  ;;  %v4287_v49 = vld [vmem:[%s5421_s30 + $0x18c] sm:$0xf] }
 0x12f   : > { %1233 = vmatmul.bf16.gmra.mxu1 %v3421_v61  ;;  %v3469_v61 = vor.u32 %v4278_v51, %v3466_v52 }
 0x130   : > { %1322 = vmatmul.bf16.gmra.mxu2 %v3425_v62 }
 0x131   : > { %1411 = vmatmul.bf16.gmra.mxu3 %v3429_v63 }
 0x13b   : > { %v1110_v10 = vpop.f32.mrf.mxu0 }
 0x13c   : > { %v1199_v11 = vpop.f32.mrf.mxu1 }
 0x13d   : > { %v1200_v16 = vadd.f32 %v1199_v11, %v1110_v10 }
 0x13e   : > { %1149 = vmatmul.bf16.gmra.mxu0 %v3433_v8 }
 0x13f   : > { %1238 = vmatmul.bf16.gmra.mxu1 %v3437_v9 }
 0x140   : > { %1327 = vmatmul.bf16.gmra.mxu2 %v3441_v12 }
 0x141   : > { %1416 = vmatmul.bf16.gmra.mxu3 %v3445_v13  ;;  %v3480_v13 = vld [vmem:[%s5421_s30 + $0x160] sm:$0xf] }
 0x143   : > { %v1288_v14 = vpop.f32.mrf.mxu2  ;;  %v1112_v17 = vpop.f32.mrf.mxu0 }
 0x144   : > { %v1377_v15 = vpop.f32.mrf.mxu3  ;;  %v1201_v18 = vpop.f32.mrf.mxu1  ;;  %v1289_v21 = vadd.f32 %v1288_v14, %v1200_v16  ;;  %v4284_v14 = vld [vmem:[%s5421_s30 + $0x16c] sm:$0xf0]  ;;  %v4282_v16 = vld [vmem:[%s5421_s30 + $0x164] sm:$0xf] }
 0x145   : > { %v1202_v28 = vadd.f32 %v1201_v18, %v1112_v17  ;;  %v3482_v17 = vld [vmem:[%s5421_s30 + $0x170] sm:$0xf0]  ;;  %v3488_v18 = vld [vmem:[%s5421_s30 + $0x168] sm:$0xf]  ;;  %v3481_v25 = vor.u32 %v4284_v14, %v3480_v13  ;;  %v4293_v13 = vld [vmem:[%s5421_s30 + $0x1b4] sm:$0xf0] }
 0x146   : > { %v1378_v33 = vadd.f32 %v1377_v15, %v1289_v21  ;;  %v3490_v21 = vld [vmem:[%s5421_s30 + $0x178] sm:$0xf0]  ;;  %v3485_v26 = vor.u32 %v4282_v16, %v3482_v17  ;;  %v4291_v14 = vld [vmem:[%s5421_s30 + $0x1ac] sm:$0xf] }
 0x148   : > { %v1457_v40 = vmax.f32 %v1378_v33, 0.0 }
 0x14b   : > { %v1290_v29 = vpop.f32.mrf.mxu2  ;;  %v1115_v35 = vpop.f32.mrf.mxu0 }
 0x14c   : > { %v1379_v30 = vpop.f32.mrf.mxu3  ;;  %v1291_v34 = vadd.f32 %v1290_v29, %v1202_v28  ;;  %v1204_v36 = vpop.f32.mrf.mxu1 }
 0x14d   : > { %v1205_v45 = vadd.f32 %v1204_v36, %v1115_v35 }
 0x14e   : > { %v1380_v39 = vadd.f32 %v1379_v30, %v1291_v34  ;;  %1154 = vmatmul.bf16.gmra.mxu0 %v3449_v31  ;;  %v3489_v31 = vor.u32 %v4285_v19, %v3488_v18 }
 0x14f   : > { %1243 = vmatmul.bf16.gmra.mxu1 %v3453_v32  ;;  %v3493_v32 = vor.u32 %v4283_v20, %v3490_v21 }
 0x150   : > { %v1458_v41 = vmax.f32 %v1380_v39, 0.0  ;;  %1332 = vmatmul.bf16.gmra.mxu2 %v3457_v37 }
 0x151   : > { %1421 = vmatmul.bf16.gmra.mxu3 %v3461_v38 }
 0x152   : > { %v4474_v42 = vpack.c.bf16 %v1458_v41, %v1457_v40 }
 0x153   : > { %v1293_v43 = vpop.f32.mrf.mxu2  ;;  %v1117_v46 = vpop.f32.mrf.mxu0 }
 0x154   : > { %v1382_v44 = vpop.f32.mrf.mxu3  ;;  %4475 = vst [vmem:[%s5504_s5] sm:$0xff] %v4474_v42   ;;  %v1206_v47 = vpop.f32.mrf.mxu1  ;;  %v1294_v50 = vadd.f32 %v1293_v43, %v1205_v45  ;;  %v3496_v42 = vld [vmem:[%s5421_s30 + $0x180] sm:$0xf]  ;;  %v4288_v43 = vld [vmem:[%s5421_s30 + $0x18c] sm:$0xf0]  ;;  %v4286_v45 = vld [vmem:[%s5421_s30 + $0x184] sm:$0xf] }
 0x155   : > { %v1207_v57 = vadd.f32 %v1206_v47, %v1117_v46  ;;  %v3498_v46 = vld [vmem:[%s5421_s30 + $0x190] sm:$0xf0]  ;;  %v3504_v47 = vld [vmem:[%s5421_s30 + $0x188] sm:$0xf]  ;;  %v3497_v54 = vor.u32 %v4288_v43, %v3496_v42  ;;  %v4297_v42 = vld [vmem:[%s5421_s30 + $0x1d4] sm:$0xf0] }
 0x156   : > { %v1383_v62 = vadd.f32 %v1382_v44, %v1294_v50  ;;  %v3506_v50 = vld [vmem:[%s5421_s30 + $0x198] sm:$0xf0]  ;;  %v3501_v55 = vor.u32 %v4286_v45, %v3498_v46  ;;  %v4295_v43 = vld [vmem:[%s5421_s30 + $0x1cc] sm:$0xf] }
 0x158   : > { %v1459_v5 = vmax.f32 %v1383_v62, 0.0 }
 0x15b   : > { %v1295_v58 = vpop.f32.mrf.mxu2  ;;  %v1120_v0 = vpop.f32.mrf.mxu0 }
 0x15c   : > { %v1384_v59 = vpop.f32.mrf.mxu3  ;;  %v1296_v63 = vadd.f32 %v1295_v58, %v1207_v57  ;;  %v1209_v1 = vpop.f32.mrf.mxu1 }
 0x15d   : > { %v1210_v10 = vadd.f32 %v1209_v1, %v1120_v0 }
 0x15e   : > { %v1385_v4 = vadd.f32 %v1384_v59, %v1296_v63  ;;  %1159 = vmatmul.bf16.gmra.mxu0 %v3465_v60  ;;  %v3505_v60 = vor.u32 %v4289_v48, %v3504_v47 }
 0x15f   : > { %1248 = vmatmul.bf16.gmra.mxu1 %v3469_v61  ;;  %v3509_v61 = vor.u32 %v4287_v49, %v3506_v50 }
 0x160   : > { %v1460_v6 = vmax.f32 %v1385_v4, 0.0  ;;  %1337 = vmatmul.bf16.gmra.mxu2 %v3473_v2 }
 0x161   : > { %1426 = vmatmul.bf16.gmra.mxu3 %v3477_v3 }
 0x162   : > { %v4479_v7 = vpack.c.bf16 %v1460_v6, %v1459_v5 }
 0x163   : > { %v1298_v8 = vpop.f32.mrf.mxu2  ;;  %v1122_v11 = vpop.f32.mrf.mxu0 }
 0x164   : > { %v1387_v9 = vpop.f32.mrf.mxu3  ;;  %4711 = vst [vmem:[%s5504_s5 + $0x8] sm:$0xff] %v4479_v7   ;;  %v1211_v12 = vpop.f32.mrf.mxu1  ;;  %v1299_v15 = vadd.f32 %v1298_v8, %v1210_v10  ;;  %v3512_v7 = vld [vmem:[%s5421_s30 + $0x1a0] sm:$0xf]  ;;  %v4292_v8 = vld [vmem:[%s5421_s30 + $0x1ac] sm:$0xf0] }
 0x165   : > { %v1212_v22 = vadd.f32 %v1211_v12, %v1122_v11  ;;  %v4290_v10 = vld [vmem:[%s5421_s30 + $0x1a4] sm:$0xf]  ;;  %v3514_v11 = vld [vmem:[%s5421_s30 + $0x1b0] sm:$0xf0]  ;;  %v3520_v12 = vld [vmem:[%s5421_s30 + $0x1a8] sm:$0xf]  ;;  %v3513_v19 = vor.u32 %v4292_v8, %v3512_v7 }
 0x166   : > { %v1388_v27 = vadd.f32 %v1387_v9, %v1299_v15  ;;  %v3522_v15 = vld [vmem:[%s5421_s30 + $0x1b8] sm:$0xf0]  ;;  %v3517_v20 = vor.u32 %v4290_v10, %v3514_v11  ;;  %v4301_v7 = vld [vmem:[%s5421_s30 + $0x1f4] sm:$0xf0]  ;;  %v4299_v8 = vld [vmem:[%s5421_s30 + $0x1ec] sm:$0xf] }
 0x168   : > { %v1461_v34 = vmax.f32 %v1388_v27, 0.0 }
 0x16b   : > { %v1300_v23 = vpop.f32.mrf.mxu2  ;;  %v1125_v29 = vpop.f32.mrf.mxu0 }
 0x16c   : > { %v1389_v24 = vpop.f32.mrf.mxu3  ;;  %v1301_v28 = vadd.f32 %v1300_v23, %v1212_v22  ;;  %v1214_v30 = vpop.f32.mrf.mxu1 }
 0x16d   : > { %v1215_v39 = vadd.f32 %v1214_v30, %v1125_v29 }
 0x16e   : > { %v1390_v33 = vadd.f32 %v1389_v24, %v1301_v28  ;;  %1164 = vmatmul.bf16.gmra.mxu0 %v3481_v25  ;;  %v3521_v25 = vor.u32 %v4293_v13, %v3520_v12 }
 0x16f   : > { %1253 = vmatmul.bf16.gmra.mxu1 %v3485_v26  ;;  %v3525_v26 = vor.u32 %v4291_v14, %v3522_v15 }
 0x170   : > { %v1462_v35 = vmax.f32 %v1390_v33, 0.0  ;;  %1342 = vmatmul.bf16.gmra.mxu2 %v3489_v31 }
 0x171   : > { %1431 = vmatmul.bf16.gmra.mxu3 %v3493_v32 }
 0x172   : > { %v4484_v36 = vpack.c.bf16 %v1462_v35, %v1461_v34 }
 0x173   : > { %v1303_v37 = vpop.f32.mrf.mxu2  ;;  %v1127_v40 = vpop.f32.mrf.mxu0 }
 0x174   : > { %v1392_v38 = vpop.f32.mrf.mxu3  ;;  %4712 = vst [vmem:[%s5504_s5 + $0x10] sm:$0xff] %v4484_v36   ;;  %v1216_v41 = vpop.f32.mrf.mxu1  ;;  %v1304_v44 = vadd.f32 %v1303_v37, %v1215_v39  ;;  %v3528_v36 = vld [vmem:[%s5421_s30 + $0x1c0] sm:$0xf]  ;;  %v4296_v37 = vld [vmem:[%s5421_s30 + $0x1cc] sm:$0xf0] }
 0x175   : > { %v1217_v51 = vadd.f32 %v1216_v41, %v1127_v40  ;;  %v4294_v39 = vld [vmem:[%s5421_s30 + $0x1c4] sm:$0xf]  ;;  %v3530_v40 = vld [vmem:[%s5421_s30 + $0x1d0] sm:$0xf0]  ;;  %v3536_v41 = vld [vmem:[%s5421_s30 + $0x1c8] sm:$0xf]  ;;  %v3529_v48 = vor.u32 %v4296_v37, %v3528_v36 }
 0x176   : > { %v1393_v56 = vadd.f32 %v1392_v38, %v1304_v44  ;;  %v3538_v44 = vld [vmem:[%s5421_s30 + $0x1d8] sm:$0xf0]  ;;  %v3533_v49 = vor.u32 %v4294_v39, %v3530_v40 }
 0x178   : > { %v1463_v63 = vmax.f32 %v1393_v56, 0.0 }
 0x17b   : > { %v1305_v52 = vpop.f32.mrf.mxu2  ;;  %v1130_v58 = vpop.f32.mrf.mxu0 }
 0x17c   : > { %v1394_v53 = vpop.f32.mrf.mxu3  ;;  %v1306_v57 = vadd.f32 %v1305_v52, %v1217_v51  ;;  %v1219_v59 = vpop.f32.mrf.mxu1 }
 0x17d   : > { %v1220_v4 = vadd.f32 %v1219_v59, %v1130_v58 }
 0x17e   : > { %v1395_v62 = vadd.f32 %v1394_v53, %v1306_v57  ;;  %1169 = vmatmul.bf16.gmra.mxu0 %v3497_v54  ;;  %v3537_v54 = vor.u32 %v4297_v42, %v3536_v41 }
 0x17f   : > { %1258 = vmatmul.bf16.gmra.mxu1 %v3501_v55  ;;  %v3541_v55 = vor.u32 %v4295_v43, %v3538_v44 }
 0x180   : > { %v1464_v0 = vmax.f32 %v1395_v62, 0.0  ;;  %1347 = vmatmul.bf16.gmra.mxu2 %v3505_v60 }
 0x181   : > { %1436 = vmatmul.bf16.gmra.mxu3 %v3509_v61 }
 0x182   : > { %v4489_v1 = vpack.c.bf16 %v1464_v0, %v1463_v63 }
 0x183   : > { %v1308_v2 = vpop.f32.mrf.mxu2  ;;  %v1132_v5 = vpop.f32.mrf.mxu0 }
 0x184   : > { %v1397_v3 = vpop.f32.mrf.mxu3  ;;  %4713 = vst [vmem:[%s5504_s5 + $0x18] sm:$0xff] %v4489_v1   ;;  %v1221_v6 = vpop.f32.mrf.mxu1  ;;  %v1309_v9 = vadd.f32 %v1308_v2, %v1220_v4  ;;  %v3544_v1 = vld [vmem:[%s5421_s30 + $0x1e0] sm:$0xf]  ;;  %v4300_v2 = vld [vmem:[%s5421_s30 + $0x1ec] sm:$0xf0] }
 0x185   : > { %v1222_v16 = vadd.f32 %v1221_v6, %v1132_v5  ;;  %v4298_v4 = vld [vmem:[%s5421_s30 + $0x1e4] sm:$0xf]  ;;  %v3546_v5 = vld [vmem:[%s5421_s30 + $0x1f0] sm:$0xf0]  ;;  %v3552_v6 = vld [vmem:[%s5421_s30 + $0x1e8] sm:$0xf]  ;;  %v3545_v13 = vor.u32 %v4300_v2, %v3544_v1 }
 0x186   : > { %v1398_v21 = vadd.f32 %v1397_v3, %v1309_v9  ;;  %v3554_v9 = vld [vmem:[%s5421_s30 + $0x1f8] sm:$0xf0]  ;;  %v3549_v14 = vor.u32 %v4298_v4, %v3546_v5 }
 0x188   : > { %v1465_v28 = vmax.f32 %v1398_v21, 0.0 }
 0x18b   : > { %v1310_v17 = vpop.f32.mrf.mxu2  ;;  %v1135_v23 = vpop.f32.mrf.mxu0 }
 0x18c   : > { %v1399_v18 = vpop.f32.mrf.mxu3  ;;  %v1311_v22 = vadd.f32 %v1310_v17, %v1222_v16  ;;  %v1224_v24 = vpop.f32.mrf.mxu1 }
 0x18d   : > { %v1225_v33 = vadd.f32 %v1224_v24, %v1135_v23 }
 0x18e   : > { %v1400_v27 = vadd.f32 %v1399_v18, %v1311_v22  ;;  %1174 = vmatmul.bf16.gmra.mxu0 %v3513_v19  ;;  %v3553_v19 = vor.u32 %v4301_v7, %v3552_v6 }
 0x18f   : > { %1263 = vmatmul.bf16.gmra.mxu1 %v3517_v20  ;;  %v3557_v20 = vor.u32 %v4299_v8, %v3554_v9 }
 0x190   : > { %v1466_v29 = vmax.f32 %v1400_v27, 0.0  ;;  %1352 = vmatmul.bf16.gmra.mxu2 %v3521_v25 }
 0x191   : > { %1441 = vmatmul.bf16.gmra.mxu3 %v3525_v26 }
 0x192   : > { %v4494_v30 = vpack.c.bf16 %v1466_v29, %v1465_v28 }
 0x193   : > { %v1313_v31 = vpop.f32.mrf.mxu2  ;;  %v1137_v34 = vpop.f32.mrf.mxu0 }
 0x194   : > { %v1402_v32 = vpop.f32.mrf.mxu3  ;;  %4714 = vst [vmem:[%s5504_s5 + $0x20] sm:$0xff] %v4494_v30   ;;  %v1226_v35 = vpop.f32.mrf.mxu1  ;;  %v1314_v38 = vadd.f32 %v1313_v31, %v1225_v33 }
 0x195   : > { %v1227_v45 = vadd.f32 %v1226_v35, %v1137_v34 }
 0x196   : > { %v1403_v50 = vadd.f32 %v1402_v32, %v1314_v38 }
 0x198   : > { %v1467_v57 = vmax.f32 %v1403_v50, 0.0 }
 0x19b   : > { %v1315_v46 = vpop.f32.mrf.mxu2  ;;  %v1140_v52 = vpop.f32.mrf.mxu0 }
 0x19c   : > { %v1404_v47 = vpop.f32.mrf.mxu3  ;;  %v1316_v51 = vadd.f32 %v1315_v46, %v1227_v45  ;;  %v1229_v53 = vpop.f32.mrf.mxu1 }
 0x19d   : > { %v1230_v62 = vadd.f32 %v1229_v53, %v1140_v52 }
 0x19e   : > { %v1405_v56 = vadd.f32 %v1404_v47, %v1316_v51  ;;  %1179 = vmatmul.bf16.gmra.mxu0 %v3529_v48 }
 0x19f   : > { %1268 = vmatmul.bf16.gmra.mxu1 %v3533_v49 }
 0x1a0   : > { %v1468_v58 = vmax.f32 %v1405_v56, 0.0  ;;  %1357 = vmatmul.bf16.gmra.mxu2 %v3537_v54 }
 0x1a1   : > { %1446 = vmatmul.bf16.gmra.mxu3 %v3541_v55 }
 0x1a2   : > { %v4499_v59 = vpack.c.bf16 %v1468_v58, %v1467_v57 }
 0x1a3   : > { %v1318_v60 = vpop.f32.mrf.mxu2  ;;  %v1142_v63 = vpop.f32.mrf.mxu0 }
 0x1a4   : > { %v1407_v61 = vpop.f32.mrf.mxu3  ;;  %4715 = vst [vmem:[%s5504_s5 + $0x28] sm:$0xff] %v4499_v59   ;;  %v1231_v0 = vpop.f32.mrf.mxu1  ;;  %v1319_v3 = vadd.f32 %v1318_v60, %v1230_v62 }
 0x1a5   : > { %v1232_v10 = vadd.f32 %v1231_v0, %v1142_v63 }
 0x1a6   : > { %v1408_v15 = vadd.f32 %v1407_v61, %v1319_v3 }
 0x1a8   : > { %v1469_v22 = vmax.f32 %v1408_v15, 0.0 }
 0x1ab   : > { %v1320_v11 = vpop.f32.mrf.mxu2  ;;  %v1145_v17 = vpop.f32.mrf.mxu0 }
 0x1ac   : > { %v1409_v12 = vpop.f32.mrf.mxu3  ;;  %v1321_v16 = vadd.f32 %v1320_v11, %v1232_v10  ;;  %v1234_v18 = vpop.f32.mrf.mxu1 }
 0x1ad   : > { %v1235_v27 = vadd.f32 %v1234_v18, %v1145_v17 }
 0x1ae   : > { %v1410_v21 = vadd.f32 %v1409_v12, %v1321_v16  ;;  %1184 = vmatmul.bf16.gmra.mxu0 %v3545_v13 }
 0x1af   : > { %1273 = vmatmul.bf16.gmra.mxu1 %v3549_v14 }
 0x1b0   : > { %v1470_v23 = vmax.f32 %v1410_v21, 0.0  ;;  %1362 = vmatmul.bf16.gmra.mxu2 %v3553_v19 }
 0x1b1   : > { %1451 = vmatmul.bf16.gmra.mxu3 %v3557_v20 }
 0x1b2   : > { %v4504_v24 = vpack.c.bf16 %v1470_v23, %v1469_v22 }
 0x1b3   : > { %v1323_v25 = vpop.f32.mrf.mxu2  ;;  %v1147_v28 = vpop.f32.mrf.mxu0 }
 0x1b4   : > { %v1412_v26 = vpop.f32.mrf.mxu3  ;;  %4716 = vst [vmem:[%s5504_s5 + $0x30] sm:$0xff] %v4504_v24   ;;  %v1236_v29 = vpop.f32.mrf.mxu1  ;;  %v1324_v30 = vadd.f32 %v1323_v25, %v1235_v27 }
 0x1b5   : > { %v1237_v31 = vadd.f32 %v1236_v29, %v1147_v28 }
 0x1b6   : > { %v1413_v34 = vadd.f32 %v1412_v26, %v1324_v30 }
 0x1b8   : > { %v1471_v39 = vmax.f32 %v1413_v34, 0.0 }
 0x1bb   : > { %v1325_v32 = vpop.f32.mrf.mxu2  ;;  %v1150_v36 = vpop.f32.mrf.mxu0 }
 0x1bc   : > { %v1414_v33 = vpop.f32.mrf.mxu3  ;;  %v1326_v35 = vadd.f32 %v1325_v32, %v1237_v31  ;;  %v1239_v37 = vpop.f32.mrf.mxu1 }
 0x1bd   : > { %v1240_v44 = vadd.f32 %v1239_v37, %v1150_v36 }
 0x1be   : > { %v1415_v38 = vadd.f32 %v1414_v33, %v1326_v35 }
 0x1c0   : > { %v1472_v40 = vmax.f32 %v1415_v38, 0.0 }
 0x1c2   : > { %v4509_v41 = vpack.c.bf16 %v1472_v40, %v1471_v39 }
 0x1c3   : > { %v1328_v42 = vpop.f32.mrf.mxu2  ;;  %v1152_v45 = vpop.f32.mrf.mxu0 }
 0x1c4   : > { %v1417_v43 = vpop.f32.mrf.mxu3  ;;  %4717 = vst [vmem:[%s5504_s5 + $0x38] sm:$0xff] %v4509_v41   ;;  %v1241_v46 = vpop.f32.mrf.mxu1  ;;  %v1329_v47 = vadd.f32 %v1328_v42, %v1240_v44 }
 0x1c5   : > { %v1242_v48 = vadd.f32 %v1241_v46, %v1152_v45 }
 0x1c6   : > { %v1418_v51 = vadd.f32 %v1417_v43, %v1329_v47 }
 0x1c8   : > { %v1473_v56 = vmax.f32 %v1418_v51, 0.0 }
 0x1cb   : > { %v1330_v49 = vpop.f32.mrf.mxu2  ;;  %v1155_v53 = vpop.f32.mrf.mxu0 }
 0x1cc   : > { %v1419_v50 = vpop.f32.mrf.mxu3  ;;  %v1331_v52 = vadd.f32 %v1330_v49, %v1242_v48  ;;  %v1244_v54 = vpop.f32.mrf.mxu1 }
 0x1cd   : > { %v1245_v61 = vadd.f32 %v1244_v54, %v1155_v53 }
 0x1ce   : > { %v1420_v55 = vadd.f32 %v1419_v50, %v1331_v52 }
 0x1d0   : > { %v1474_v57 = vmax.f32 %v1420_v55, 0.0 }
 0x1d2   : > { %v4514_v58 = vpack.c.bf16 %v1474_v57, %v1473_v56 }
 0x1d3   : > { %v1333_v59 = vpop.f32.mrf.mxu2  ;;  %v1157_v62 = vpop.f32.mrf.mxu0 }
 0x1d4   : > { %v1422_v60 = vpop.f32.mrf.mxu3  ;;  %4718 = vst [vmem:[%s5504_s5 + $0x40] sm:$0xff] %v4514_v58   ;;  %v1246_v63 = vpop.f32.mrf.mxu1  ;;  %v1334_v0 = vadd.f32 %v1333_v59, %v1245_v61 }
 0x1d5   : > { %v1247_v1 = vadd.f32 %v1246_v63, %v1157_v62 }
 0x1d6   : > { %v1423_v4 = vadd.f32 %v1422_v60, %v1334_v0 }
 0x1d8   : > { %v1475_v9 = vmax.f32 %v1423_v4, 0.0 }
 0x1db   : > { %v1335_v2 = vpop.f32.mrf.mxu2  ;;  %v1160_v6 = vpop.f32.mrf.mxu0 }
 0x1dc   : > { %v1424_v3 = vpop.f32.mrf.mxu3  ;;  %v1336_v5 = vadd.f32 %v1335_v2, %v1247_v1  ;;  %v1249_v7 = vpop.f32.mrf.mxu1 }
 0x1dd   : > { %v1250_v14 = vadd.f32 %v1249_v7, %v1160_v6 }
 0x1de   : > { %v1425_v8 = vadd.f32 %v1424_v3, %v1336_v5 }
 0x1e0   : > { %v1476_v10 = vmax.f32 %v1425_v8, 0.0 }
 0x1e2   : > { %v4519_v11 = vpack.c.bf16 %v1476_v10, %v1475_v9 }
 0x1e3   : > { %v1338_v12 = vpop.f32.mrf.mxu2  ;;  %v1162_v15 = vpop.f32.mrf.mxu0 }
 0x1e4   : > { %v1427_v13 = vpop.f32.mrf.mxu3  ;;  %4719 = vst [vmem:[%s5504_s5 + $0x48] sm:$0xff] %v4519_v11   ;;  %v1251_v16 = vpop.f32.mrf.mxu1  ;;  %v1339_v17 = vadd.f32 %v1338_v12, %v1250_v14 }
 0x1e5   : > { %v1252_v18 = vadd.f32 %v1251_v16, %v1162_v15 }
 0x1e6   : > { %v1428_v21 = vadd.f32 %v1427_v13, %v1339_v17 }
 0x1e8   : > { %v1477_v26 = vmax.f32 %v1428_v21, 0.0 }
 0x1eb   : > { %v1340_v19 = vpop.f32.mrf.mxu2  ;;  %v1165_v23 = vpop.f32.mrf.mxu0 }
 0x1ec   : > { %v1429_v20 = vpop.f32.mrf.mxu3  ;;  %v1341_v22 = vadd.f32 %v1340_v19, %v1252_v18  ;;  %v1254_v24 = vpop.f32.mrf.mxu1 }
 0x1ed   : > { %v1255_v31 = vadd.f32 %v1254_v24, %v1165_v23 }
 0x1ee   : > { %v1430_v25 = vadd.f32 %v1429_v20, %v1341_v22 }
 0x1f0   : > { %v1478_v27 = vmax.f32 %v1430_v25, 0.0 }
 0x1f2   : > { %v4524_v28 = vpack.c.bf16 %v1478_v27, %v1477_v26 }
 0x1f3   : > { %v1343_v29 = vpop.f32.mrf.mxu2  ;;  %v1167_v32 = vpop.f32.mrf.mxu0 }
 0x1f4   : > { %v1432_v30 = vpop.f32.mrf.mxu3  ;;  %4720 = vst [vmem:[%s5504_s5 + $0x50] sm:$0xff] %v4524_v28   ;;  %v1256_v33 = vpop.f32.mrf.mxu1  ;;  %v1344_v34 = vadd.f32 %v1343_v29, %v1255_v31 }
 0x1f5   : > { %v1257_v35 = vadd.f32 %v1256_v33, %v1167_v32 }
 0x1f6   : > { %v1433_v38 = vadd.f32 %v1432_v30, %v1344_v34 }
 0x1f8   : > { %v1479_v43 = vmax.f32 %v1433_v38, 0.0 }
 0x1fb   : > { %v1345_v36 = vpop.f32.mrf.mxu2  ;;  %v1170_v40 = vpop.f32.mrf.mxu0 }
 0x1fc   : > { %v1434_v37 = vpop.f32.mrf.mxu3  ;;  %v1346_v39 = vadd.f32 %v1345_v36, %v1257_v35  ;;  %v1259_v41 = vpop.f32.mrf.mxu1 }
 0x1fd   : > { %v1260_v48 = vadd.f32 %v1259_v41, %v1170_v40 }
 0x1fe   : > { %v1435_v42 = vadd.f32 %v1434_v37, %v1346_v39 }
 0x200   : > { %v1480_v44 = vmax.f32 %v1435_v42, 0.0 }
 0x202   : > { %v4529_v45 = vpack.c.bf16 %v1480_v44, %v1479_v43 }
 0x203   : > { %v1348_v46 = vpop.f32.mrf.mxu2  ;;  %v1172_v49 = vpop.f32.mrf.mxu0 }
 0x204   : > { %v1437_v47 = vpop.f32.mrf.mxu3  ;;  %4721 = vst [vmem:[%s5504_s5 + $0x58] sm:$0xff] %v4529_v45   ;;  %v1261_v50 = vpop.f32.mrf.mxu1  ;;  %v1349_v51 = vadd.f32 %v1348_v46, %v1260_v48 }
 0x205   : > { %v1262_v52 = vadd.f32 %v1261_v50, %v1172_v49 }
 0x206   : > { %v1438_v55 = vadd.f32 %v1437_v47, %v1349_v51 }
 0x208   : > { %v1481_v60 = vmax.f32 %v1438_v55, 0.0 }
 0x20b   : > { %v1350_v53 = vpop.f32.mrf.mxu2  ;;  %v1175_v57 = vpop.f32.mrf.mxu0 }
 0x20c   : > { %v1439_v54 = vpop.f32.mrf.mxu3  ;;  %v1351_v56 = vadd.f32 %v1350_v53, %v1262_v52  ;;  %v1264_v58 = vpop.f32.mrf.mxu1 }
 0x20d   : > { %v1265_v1 = vadd.f32 %v1264_v58, %v1175_v57 }
 0x20e   : > { %v1440_v59 = vadd.f32 %v1439_v54, %v1351_v56 }
 0x210   : > { %v1482_v61 = vmax.f32 %v1440_v59, 0.0 }
 0x212   : > { %v4534_v62 = vpack.c.bf16 %v1482_v61, %v1481_v60 }
 0x213   : > { %v1353_v63 = vpop.f32.mrf.mxu2  ;;  %v1177_v2 = vpop.f32.mrf.mxu0 }
 0x214   : > { %v1442_v0 = vpop.f32.mrf.mxu3  ;;  %4722 = vst [vmem:[%s5504_s5 + $0x60] sm:$0xff] %v4534_v62   ;;  %v1266_v3 = vpop.f32.mrf.mxu1  ;;  %v1354_v4 = vadd.f32 %v1353_v63, %v1265_v1 }
 0x215   : > { %v1267_v5 = vadd.f32 %v1266_v3, %v1177_v2 }
 0x216   : > { %v1443_v8 = vadd.f32 %v1442_v0, %v1354_v4 }
 0x218   : > { %v1483_v13 = vmax.f32 %v1443_v8, 0.0 }
 0x21b   : > { %v1355_v6 = vpop.f32.mrf.mxu2  ;;  %v1180_v10 = vpop.f32.mrf.mxu0 }
 0x21c   : > { %v1444_v7 = vpop.f32.mrf.mxu3  ;;  %v1356_v9 = vadd.f32 %v1355_v6, %v1267_v5  ;;  %v1269_v11 = vpop.f32.mrf.mxu1 }
 0x21d   : > { %v1270_v18 = vadd.f32 %v1269_v11, %v1180_v10 }
 0x21e   : > { %v1445_v12 = vadd.f32 %v1444_v7, %v1356_v9 }
 0x220   : > { %v1484_v14 = vmax.f32 %v1445_v12, 0.0 }
 0x222   : > { %v4539_v15 = vpack.c.bf16 %v1484_v14, %v1483_v13 }
 0x223   : > { %v1358_v16 = vpop.f32.mrf.mxu2  ;;  %v1182_v19 = vpop.f32.mrf.mxu0 }
 0x224   : > { %v1447_v17 = vpop.f32.mrf.mxu3  ;;  %4723 = vst [vmem:[%s5504_s5 + $0x68] sm:$0xff] %v4539_v15   ;;  %v1271_v20 = vpop.f32.mrf.mxu1  ;;  %v1359_v21 = vadd.f32 %v1358_v16, %v1270_v18 }
 0x225   : > { %v1272_v22 = vadd.f32 %v1271_v20, %v1182_v19 }
 0x226   : > { %v1448_v25 = vadd.f32 %v1447_v17, %v1359_v21 }
 0x228   : > { %v1485_v30 = vmax.f32 %v1448_v25, 0.0 }
 0x22b   : > { %v1360_v23 = vpop.f32.mrf.mxu2  ;;  %v1185_v27 = vpop.f32.mrf.mxu0 }
 0x22c   : > { %v1449_v24 = vpop.f32.mrf.mxu3  ;;  %v1361_v26 = vadd.f32 %v1360_v23, %v1272_v22  ;;  %v1274_v28 = vpop.f32.mrf.mxu1 }
 0x22d   : > { %v1275_v35 = vadd.f32 %v1274_v28, %v1185_v27 }
 0x22e   : > { %v1450_v29 = vadd.f32 %v1449_v24, %v1361_v26 }
 0x230   : > { %v1486_v31 = vmax.f32 %v1450_v29, 0.0 }
 0x232   : > { %v4544_v32 = vpack.c.bf16 %v1486_v31, %v1485_v30 }
 0x233   : > { %v1363_v33 = vpop.f32.mrf.mxu2  ;;  %v1187_v36 = vpop.f32.mrf.mxu0 }
 0x234   : > { %v1452_v34 = vpop.f32.mrf.mxu3  ;;  %4724 = vst [vmem:[%s5504_s5 + $0x70] sm:$0xff] %v4544_v32   ;;  %v1276_v37 = vpop.f32.mrf.mxu1  ;;  %v1364_v38 = vadd.f32 %v1363_v33, %v1275_v35 }
 0x235   : > { %v1277_v39 = vadd.f32 %v1276_v37, %v1187_v36 }
 0x236   : > { %v1453_v41 = vadd.f32 %v1452_v34, %v1364_v38 }
 0x238   : > { %v1487_v45 = vmax.f32 %v1453_v41, 0.0 }
 0x23b   : > { %v1365_v40 = vpop.f32.mrf.mxu2 }
 0x23c   : > { %v1366_v42 = vadd.f32 %v1365_v40, %v1277_v39  ;;  %v1454_v43 = vpop.f32.mrf.mxu3 }
 0x23e   : > { %v1455_v44 = vadd.f32 %v1454_v43, %v1366_v42 }
 0x240   : > { %v1488_v46 = vmax.f32 %v1455_v44, 0.0 }
 0x242   : > { %v4549_v47 = vpack.c.bf16 %v1488_v46, %v1487_v45 }
 0x244   : > { %4725 = vst [vmem:[%s5504_s5 + $0x78] sm:$0xff] %v4549_v47  }
 0x245 PF: > { %p1555_p10 = scmp.eq.s32.totalorder %s4850_s16, 1 }
 0x247   : > { %p1556_p11 = pnand %p1555_p10, %p172_p6 }
 0x249   : > { %1559 = sbr.rel (%p1556_p11) target bundleno = 881 (0x371), region = 63 }
 0x24e   : > { %v4373_v48 = vld [vmem:[%s5848_s2 + $0x38] sm:$0xff]  ;;  %v4372_v49 = vld [vmem:[%s5848_s2 + $0x30] sm:$0xff]  ;;  %v4371_v50 = vld [vmem:[%s5848_s2 + $0x28] sm:$0xff] }
 0x24f   : > { %1884 = vmatpush.bf16.msra.mxu0 %v4373_v48  ;;  %4757 = vmatpush.bf16.msra.mxu1 %v4373_v48  ;;  %v4370_v51 = vld [vmem:[%s5848_s2 + $0x20] sm:$0xff]  ;;  %v4369_v52 = vld [vmem:[%s5848_s2 + $0x18] sm:$0xff]  ;;  %v4368_v53 = vld [vmem:[%s5848_s2 + $0x10] sm:$0xff] }
 0x250   : > { %4758 = vmatpush.bf16.msra.mxu2 %v4373_v48  ;;  %4759 = vmatpush.bf16.msra.mxu3 %v4373_v48  ;;  %v4367_v54 = vld [vmem:[%s5848_s2 + $0x8] sm:$0xff]  ;;  %v4366_v55 = vld [vmem:[%s5848_s2] sm:$0xff]  ;;  %v4336_v0 = vld [vmem:[#allocation2 + $0x10] sm:$0xff] }
 0x251   : > { %v4334_v56 = vld [vmem:[#allocation2] sm:$0xff]  ;;  %v4335_v60 = vld [vmem:[#allocation2 + $0x8] sm:$0xff]  ;;  %v4344_v1 = vld [vmem:[#allocation2 + $0x50] sm:$0xff] }
 0x252   : > { %v4342_v57 = vld [vmem:[#allocation2 + $0x40] sm:$0xff]  ;;  %v4343_v61 = vld [vmem:[#allocation2 + $0x48] sm:$0xff]  ;;  %v4352_v2 = vld [vmem:[#allocation2 + $0x90] sm:$0xff] }
 0x253   : > { %1885 = vmatpush.bf16.msra.mxu0 %v4372_v49  ;;  %4760 = vmatpush.bf16.msra.mxu1 %v4372_v49  ;;  %v4350_v58 = vld [vmem:[#allocation2 + $0x80] sm:$0xff]  ;;  %v4351_v62 = vld [vmem:[#allocation2 + $0x88] sm:$0xff]  ;;  %v4360_v3 = vld [vmem:[#allocation2 + $0xd0] sm:$0xff] }
 0x254   : > { %4761 = vmatpush.bf16.msra.mxu2 %v4372_v49  ;;  %4762 = vmatpush.bf16.msra.mxu3 %v4372_v49  ;;  %v4358_v59 = vld [vmem:[#allocation2 + $0xc0] sm:$0xff]  ;;  %v4359_v63 = vld [vmem:[#allocation2 + $0xc8] sm:$0xff]  ;;  %v4337_v4 = vld [vmem:[#allocation2 + $0x18] sm:$0xff] }
 0x255   : > { %v4345_v5 = vld [vmem:[#allocation2 + $0x58] sm:$0xff]  ;;  %v4338_v8 = vld [vmem:[#allocation2 + $0x20] sm:$0xff]  ;;  %v4339_v12 = vld [vmem:[#allocation2 + $0x28] sm:$0xff] }
 0x256   : > { %v4353_v6 = vld [vmem:[#allocation2 + $0x98] sm:$0xff]  ;;  %v4346_v9 = vld [vmem:[#allocation2 + $0x60] sm:$0xff]  ;;  %v4347_v13 = vld [vmem:[#allocation2 + $0x68] sm:$0xff] }
 0x257   : > { %1886 = vmatpush.bf16.msra.mxu0 %v4371_v50  ;;  %4763 = vmatpush.bf16.msra.mxu1 %v4371_v50  ;;  %v4361_v7 = vld [vmem:[#allocation2 + $0xd8] sm:$0xff]  ;;  %v4354_v10 = vld [vmem:[#allocation2 + $0xa0] sm:$0xff]  ;;  %v4355_v14 = vld [vmem:[#allocation2 + $0xa8] sm:$0xff] }
 0x258   : > { %4764 = vmatpush.bf16.msra.mxu2 %v4371_v50  ;;  %4765 = vmatpush.bf16.msra.mxu3 %v4371_v50  ;;  %v4362_v11 = vld [vmem:[#allocation2 + $0xe0] sm:$0xff]  ;;  %v4363_v15 = vld [vmem:[#allocation2 + $0xe8] sm:$0xff]  ;;  %v4340_v16 = vld [vmem:[#allocation2 + $0x30] sm:$0xff] }
 0x259   : > { %v4348_v17 = vld [vmem:[#allocation2 + $0x70] sm:$0xff]  ;;  %v4341_v20 = vld [vmem:[#allocation2 + $0x38] sm:$0xff]  ;;  %v5600_v26 = vld [vmem:[%s5849_s3] ss:$0 sm:$0xff] }
 0x25a   : > { %v4356_v18 = vld [vmem:[#allocation2 + $0xb0] sm:$0xff]  ;;  %v4349_v21 = vld [vmem:[#allocation2 + $0x78] sm:$0xff] }
 0x25b   : > { %1887 = vmatpush.bf16.msra.mxu0 %v4370_v51  ;;  %4766 = vmatpush.bf16.msra.mxu1 %v4370_v51  ;;  %v4364_v19 = vld [vmem:[#allocation2 + $0xf0] sm:$0xff]  ;;  %v4357_v22 = vld [vmem:[#allocation2 + $0xb8] sm:$0xff] }
 0x25c   : > { %4767 = vmatpush.bf16.msra.mxu2 %v4370_v51  ;;  %4768 = vmatpush.bf16.msra.mxu3 %v4370_v51  ;;  %v4365_v23 = vld [vmem:[#allocation2 + $0xf8] sm:$0xff] }
 0x25f   : > { %1888 = vmatpush.bf16.msra.mxu0 %v4369_v52  ;;  %4769 = vmatpush.bf16.msra.mxu1 %v4369_v52 }
 0x260   : > { %4770 = vmatpush.bf16.msra.mxu2 %v4369_v52  ;;  %4771 = vmatpush.bf16.msra.mxu3 %v4369_v52 }
 0x263   : > { %1889 = vmatpush.bf16.msra.mxu0 %v4368_v53  ;;  %4772 = vmatpush.bf16.msra.mxu1 %v4368_v53 }
 0x264   : > { %4773 = vmatpush.bf16.msra.mxu2 %v4368_v53  ;;  %4774 = vmatpush.bf16.msra.mxu3 %v4368_v53 }
 0x267   : > { %1890 = vmatpush.bf16.msra.mxu0 %v4367_v54  ;;  %4775 = vmatpush.bf16.msra.mxu1 %v4367_v54 }
 0x268   : > { %4776 = vmatpush.bf16.msra.mxu2 %v4367_v54  ;;  %4777 = vmatpush.bf16.msra.mxu3 %v4367_v54 }
 0x26b   : > { %1891 = vmatpush.bf16.msra.mxu0 %v4366_v55  ;;  %4778 = vmatpush.bf16.msra.mxu1 %v4366_v55 }
 0x26c   : > { %4779 = vmatpush.bf16.msra.mxu2 %v4366_v55  ;;  %4780 = vmatpush.bf16.msra.mxu3 %v4366_v55 }
 0x26e   : > { %1892 = vmatmul.bf16.vlgmr.msra.gmra.mxu0 %v4334_v56  ;;  %1932 = vmatmul.bf16.vlgmr.msra.gmra.mxu1 %v4342_v57 }
 0x26f   : > { %1972 = vmatmul.bf16.vlgmr.msra.gmra.mxu2 %v4350_v58  ;;  %2012 = vmatmul.bf16.vlgmr.msra.gmra.mxu3 %v4358_v59 }
 0x27e   : > { %1897 = vmatmul.bf16.gmra.mxu0 %v4335_v60  ;;  %1937 = vmatmul.bf16.gmra.mxu1 %v4343_v61 }
 0x27f   : > { %1977 = vmatmul.bf16.gmra.mxu2 %v4351_v62  ;;  %2017 = vmatmul.bf16.gmra.mxu3 %v4359_v63 }
 0x28e   : > { %1902 = vmatmul.bf16.gmra.mxu0 %v4336_v0  ;;  %1942 = vmatmul.bf16.gmra.mxu1 %v4344_v1 }
 0x28f   : > { %1982 = vmatmul.bf16.gmra.mxu2 %v4352_v2  ;;  %2022 = vmatmul.bf16.gmra.mxu3 %v4360_v3 }
 0x29e   : > { %1907 = vmatmul.bf16.gmra.mxu0 %v4337_v4  ;;  %1947 = vmatmul.bf16.gmra.mxu1 %v4345_v5 }
 0x29f   : > { %1987 = vmatmul.bf16.gmra.mxu2 %v4353_v6  ;;  %2027 = vmatmul.bf16.gmra.mxu3 %v4361_v7 }
 0x2ae   : > { %1912 = vmatmul.bf16.gmra.mxu0 %v4338_v8  ;;  %1952 = vmatmul.bf16.gmra.mxu1 %v4346_v9 }
 0x2af   : > { %1992 = vmatmul.bf16.gmra.mxu2 %v4354_v10  ;;  %2032 = vmatmul.bf16.gmra.mxu3 %v4362_v11 }
 0x2be   : > { %1917 = vmatmul.bf16.gmra.mxu0 %v4339_v12  ;;  %1957 = vmatmul.bf16.gmra.mxu1 %v4347_v13 }
 0x2bf   : > { %1997 = vmatmul.bf16.gmra.mxu2 %v4355_v14  ;;  %2037 = vmatmul.bf16.gmra.mxu3 %v4363_v15 }
 0x2ce   : > { %1922 = vmatmul.bf16.gmra.mxu0 %v4340_v16  ;;  %1962 = vmatmul.bf16.gmra.mxu1 %v4348_v17 }
 0x2cf   : > { %2002 = vmatmul.bf16.gmra.mxu2 %v4356_v18  ;;  %2042 = vmatmul.bf16.gmra.mxu3 %v4364_v19 }
 0x2de   : > { %1927 = vmatmul.bf16.gmra.mxu0 %v4341_v20  ;;  %1967 = vmatmul.bf16.gmra.mxu1 %v4349_v21 }
 0x2df   : > { %2007 = vmatmul.bf16.gmra.mxu2 %v4357_v22  ;;  %2047 = vmatmul.bf16.gmra.mxu3 %v4365_v23 }
 0x2eb   : > { %v1893_v24 = vpop.f32.mrf.mxu0  ;;  %v1933_v25 = vpop.f32.mrf.mxu1 }
 0x2ec   : > { %v1894_v31 = vadd.f32 %v5600_v26, %v1893_v24  ;;  %v1934_v32 = vadd.f32 %v5600_v26, %v1933_v25 }
 0x2f2   : > { %v1973_v27 = vpop.f32.mrf.mxu2  ;;  %v2013_v28 = vpop.f32.mrf.mxu3 }
 0x2f3   : > { %v1895_v29 = vpop.f32.mrf.mxu0  ;;  %v1935_v30 = vpop.f32.mrf.mxu1  ;;  %v1974_v39 = vadd.f32 %v5600_v26, %v1973_v27  ;;  %v2014_v40 = vadd.f32 %v5600_v26, %v2013_v28 }
 0x2f4   : > { %v1896_v33 = vadd.f32 %v5600_v26, %v1895_v29  ;;  %v1936_v34 = vadd.f32 %v5600_v26, %v1935_v30 }
 0x2f6   : > { %v4554_v35 = vpack.c.bf16 %v1896_v33, %v1894_v31  ;;  %v4594_v36 = vpack.c.bf16 %v1936_v34, %v1934_v32 }
 0x2f8   : > { %4555 = vst [vmem:[#allocation3 + $0xb0] sm:$0xff] %v4554_v35  }
 0x2f9   : > { %4733 = vst [vmem:[#allocation3 + $0x80] sm:$0xff] %v4594_v36  }
 0x2fa   : > { %v1975_v37 = vpop.f32.mrf.mxu2  ;;  %v2015_v38 = vpop.f32.mrf.mxu3 }
 0x2fb   : > { %v1976_v41 = vadd.f32 %v5600_v26, %v1975_v37  ;;  %v2016_v42 = vadd.f32 %v5600_v26, %v2015_v38  ;;  %v1898_v43 = vpop.f32.mrf.mxu0  ;;  %v1938_v44 = vpop.f32.mrf.mxu1 }
 0x2fc   : > { %v1899_v51 = vadd.f32 %v5600_v26, %v1898_v43  ;;  %v1939_v52 = vadd.f32 %v5600_v26, %v1938_v44 }
 0x2fd   : > { %v4634_v45 = vpack.c.bf16 %v1976_v41, %v1974_v39  ;;  %v4674_v46 = vpack.c.bf16 %v2016_v42, %v2014_v40 }
 0x2ff   : > { %4741 = vst [vmem:[#allocation3 + $0x38] sm:$0xff] %v4634_v45  }
 0x300   : > { %4749 = vst [vmem:[#allocation3 + $0xa8] sm:$0xff] %v4674_v46  }
 0x302   : > { %v1978_v47 = vpop.f32.mrf.mxu2  ;;  %v2018_v48 = vpop.f32.mrf.mxu3 }
 0x303   : > { %v1900_v49 = vpop.f32.mrf.mxu0  ;;  %v1940_v50 = vpop.f32.mrf.mxu1  ;;  %v1979_v59 = vadd.f32 %v5600_v26, %v1978_v47  ;;  %v2019_v60 = vadd.f32 %v5600_v26, %v2018_v48 }
 0x304   : > { %v1901_v53 = vadd.f32 %v5600_v26, %v1900_v49  ;;  %v1941_v54 = vadd.f32 %v5600_v26, %v1940_v50 }
 0x306   : > { %v4559_v55 = vpack.c.bf16 %v1901_v53, %v1899_v51  ;;  %v4599_v56 = vpack.c.bf16 %v1941_v54, %v1939_v52 }
 0x308   : > { %4726 = vst [vmem:[#allocation3] sm:$0xff] %v4559_v55  }
 0x309   : > { %4734 = vst [vmem:[#allocation3 + $0x88] sm:$0xff] %v4599_v56  }
 0x30a   : > { %v1980_v57 = vpop.f32.mrf.mxu2  ;;  %v2020_v58 = vpop.f32.mrf.mxu3 }
 0x30b   : > { %v1981_v61 = vadd.f32 %v5600_v26, %v1980_v57  ;;  %v2021_v62 = vadd.f32 %v5600_v26, %v2020_v58  ;;  %v1903_v63 = vpop.f32.mrf.mxu0  ;;  %v1943_v0 = vpop.f32.mrf.mxu1 }
 0x30c   : > { %v1904_v7 = vadd.f32 %v5600_v26, %v1903_v63  ;;  %v1944_v8 = vadd.f32 %v5600_v26, %v1943_v0 }
 0x30d   : > { %v4639_v1 = vpack.c.bf16 %v1981_v61, %v1979_v59  ;;  %v4679_v2 = vpack.c.bf16 %v2021_v62, %v2019_v60 }
 0x30f   : > { %4742 = vst [vmem:[#allocation3 + $0x58] sm:$0xff] %v4639_v1  }
 0x310   : > { %4750 = vst [vmem:[#allocation3 + $0xd0] sm:$0xff] %v4679_v2  }
 0x312   : > { %v1983_v3 = vpop.f32.mrf.mxu2  ;;  %v2023_v4 = vpop.f32.mrf.mxu3 }
 0x313   : > { %v1905_v5 = vpop.f32.mrf.mxu0  ;;  %v1945_v6 = vpop.f32.mrf.mxu1  ;;  %v1984_v15 = vadd.f32 %v5600_v26, %v1983_v3  ;;  %v2024_v16 = vadd.f32 %v5600_v26, %v2023_v4 }
 0x314   : > { %v1906_v9 = vadd.f32 %v5600_v26, %v1905_v5  ;;  %v1946_v10 = vadd.f32 %v5600_v26, %v1945_v6 }
 0x316   : > { %v4564_v11 = vpack.c.bf16 %v1906_v9, %v1904_v7  ;;  %v4604_v12 = vpack.c.bf16 %v1946_v10, %v1944_v8 }
 0x318   : > { %4727 = vst [vmem:[#allocation3 + $0xd8] sm:$0xff] %v4564_v11  }
 0x319   : > { %4735 = vst [vmem:[#allocation3 + $0xe8] sm:$0xff] %v4604_v12  }
 0x31a   : > { %v1985_v13 = vpop.f32.mrf.mxu2  ;;  %v2025_v14 = vpop.f32.mrf.mxu3 }
 0x31b   : > { %v1986_v17 = vadd.f32 %v5600_v26, %v1985_v13  ;;  %v2026_v18 = vadd.f32 %v5600_v26, %v2025_v14  ;;  %v1908_v19 = vpop.f32.mrf.mxu0  ;;  %v1948_v20 = vpop.f32.mrf.mxu1 }
 0x31c   : > { %v1909_v28 = vadd.f32 %v5600_v26, %v1908_v19  ;;  %v1949_v29 = vadd.f32 %v5600_v26, %v1948_v20 }
 0x31d   : > { %v4644_v21 = vpack.c.bf16 %v1986_v17, %v1984_v15  ;;  %v4684_v22 = vpack.c.bf16 %v2026_v18, %v2024_v16 }
 0x31f   : > { %4743 = vst [vmem:[#allocation3 + $0x40] sm:$0xff] %v4644_v21  }
 0x320   : > { %4751 = vst [vmem:[#allocation3 + $0x10] sm:$0xff] %v4684_v22  }
 0x322   : > { %v1988_v23 = vpop.f32.mrf.mxu2  ;;  %v2028_v24 = vpop.f32.mrf.mxu3 }
 0x323   : > { %v1910_v25 = vpop.f32.mrf.mxu0  ;;  %v1950_v27 = vpop.f32.mrf.mxu1  ;;  %v1989_v36 = vadd.f32 %v5600_v26, %v1988_v23  ;;  %v2029_v37 = vadd.f32 %v5600_v26, %v2028_v24 }
 0x324   : > { %v1911_v30 = vadd.f32 %v5600_v26, %v1910_v25  ;;  %v1951_v31 = vadd.f32 %v5600_v26, %v1950_v27 }
 0x326   : > { %v4569_v32 = vpack.c.bf16 %v1911_v30, %v1909_v28  ;;  %v4609_v33 = vpack.c.bf16 %v1951_v31, %v1949_v29 }
 0x328   : > { %4728 = vst [vmem:[#allocation3 + $0x18] sm:$0xff] %v4569_v32  }
 0x329   : > { %4736 = vst [vmem:[#allocation3 + $0xb8] sm:$0xff] %v4609_v33  }
 0x32a   : > { %v1990_v34 = vpop.f32.mrf.mxu2  ;;  %v2030_v35 = vpop.f32.mrf.mxu3 }
 0x32b   : > { %v1991_v38 = vadd.f32 %v5600_v26, %v1990_v34  ;;  %v2031_v39 = vadd.f32 %v5600_v26, %v2030_v35  ;;  %v1913_v40 = vpop.f32.mrf.mxu0  ;;  %v1953_v41 = vpop.f32.mrf.mxu1 }
 0x32c   : > { %v1914_v48 = vadd.f32 %v5600_v26, %v1913_v40  ;;  %v1954_v49 = vadd.f32 %v5600_v26, %v1953_v41 }
 0x32d   : > { %v4649_v42 = vpack.c.bf16 %v1991_v38, %v1989_v36  ;;  %v4689_v43 = vpack.c.bf16 %v2031_v39, %v2029_v37 }
 0x32f   : > { %4744 = vst [vmem:[#allocation3 + $0xc8] sm:$0xff] %v4649_v42  }
 0x330   : > { %4752 = vst [vmem:[#allocation3 + $0x28] sm:$0xff] %v4689_v43  }
 0x332   : > { %v1993_v44 = vpop.f32.mrf.mxu2  ;;  %v2033_v45 = vpop.f32.mrf.mxu3 }
 0x333   : > { %v1915_v46 = vpop.f32.mrf.mxu0  ;;  %v1955_v47 = vpop.f32.mrf.mxu1  ;;  %v1994_v56 = vadd.f32 %v5600_v26, %v1993_v44  ;;  %v2034_v57 = vadd.f32 %v5600_v26, %v2033_v45 }
 0x334   : > { %v1916_v50 = vadd.f32 %v5600_v26, %v1915_v46  ;;  %v1956_v51 = vadd.f32 %v5600_v26, %v1955_v47 }
 0x336   : > { %v4574_v52 = vpack.c.bf16 %v1916_v50, %v1914_v48  ;;  %v4614_v53 = vpack.c.bf16 %v1956_v51, %v1954_v49 }
 0x338   : > { %4729 = vst [vmem:[#allocation3 + $0x50] sm:$0xff] %v4574_v52  }
 0x339   : > { %4737 = vst [vmem:[#allocation3 + $0x60] sm:$0xff] %v4614_v53  }
 0x33a   : > { %v1995_v54 = vpop.f32.mrf.mxu2  ;;  %v2035_v55 = vpop.f32.mrf.mxu3 }
 0x33b   : > { %v1996_v58 = vadd.f32 %v5600_v26, %v1995_v54  ;;  %v2036_v59 = vadd.f32 %v5600_v26, %v2035_v55  ;;  %v1918_v60 = vpop.f32.mrf.mxu0  ;;  %v1958_v61 = vpop.f32.mrf.mxu1 }
 0x33c   : > { %v1919_v4 = vadd.f32 %v5600_v26, %v1918_v60  ;;  %v1959_v5 = vadd.f32 %v5600_v26, %v1958_v61 }
 0x33d   : > { %v4654_v62 = vpack.c.bf16 %v1996_v58, %v1994_v56  ;;  %v4694_v63 = vpack.c.bf16 %v2036_v59, %v2034_v57 }
 0x33f   : > { %4745 = vst [vmem:[#allocation3 + $0xe0] sm:$0xff] %v4654_v62  }
 0x340   : > { %4753 = vst [vmem:[#allocation3 + $0xa0] sm:$0xff] %v4694_v63  }
 0x342   : > { %v1998_v0 = vpop.f32.mrf.mxu2  ;;  %v2038_v1 = vpop.f32.mrf.mxu3 }
 0x343   : > { %v1920_v2 = vpop.f32.mrf.mxu0  ;;  %v1960_v3 = vpop.f32.mrf.mxu1  ;;  %v1999_v12 = vadd.f32 %v5600_v26, %v1998_v0  ;;  %v2039_v13 = vadd.f32 %v5600_v26, %v2038_v1 }
 0x344   : > { %v1921_v6 = vadd.f32 %v5600_v26, %v1920_v2  ;;  %v1961_v7 = vadd.f32 %v5600_v26, %v1960_v3 }
 0x346   : > { %v4579_v8 = vpack.c.bf16 %v1921_v6, %v1919_v4  ;;  %v4619_v9 = vpack.c.bf16 %v1961_v7, %v1959_v5 }
 0x348   : > { %4730 = vst [vmem:[#allocation3 + $0x68] sm:$0xff] %v4579_v8  }
 0x349   : > { %4738 = vst [vmem:[#allocation3 + $0xf0] sm:$0xff] %v4619_v9  }
 0x34a   : > { %v2000_v10 = vpop.f32.mrf.mxu2  ;;  %v2040_v11 = vpop.f32.mrf.mxu3 }
 0x34b   : > { %v2001_v14 = vadd.f32 %v5600_v26, %v2000_v10  ;;  %v2041_v15 = vadd.f32 %v5600_v26, %v2040_v11  ;;  %v1923_v16 = vpop.f32.mrf.mxu0  ;;  %v1963_v17 = vpop.f32.mrf.mxu1 }
 0x34c   : > { %v1924_v24 = vadd.f32 %v5600_v26, %v1923_v16  ;;  %v1964_v25 = vadd.f32 %v5600_v26, %v1963_v17 }
 0x34d   : > { %v4659_v18 = vpack.c.bf16 %v2001_v14, %v1999_v12  ;;  %v4699_v19 = vpack.c.bf16 %v2041_v15, %v2039_v13 }
 0x34f   : > { %4746 = vst [vmem:[#allocation3 + $0x90] sm:$0xff] %v4659_v18  }
 0x350   : > { %4754 = vst [vmem:[#allocation3 + $0xf8] sm:$0xff] %v4699_v19  }
 0x352   : > { %v2003_v20 = vpop.f32.mrf.mxu2  ;;  %v2043_v21 = vpop.f32.mrf.mxu3 }
 0x353   : > { %v1925_v22 = vpop.f32.mrf.mxu0  ;;  %v1965_v23 = vpop.f32.mrf.mxu1  ;;  %v2004_v33 = vadd.f32 %v5600_v26, %v2003_v20  ;;  %v2044_v34 = vadd.f32 %v5600_v26, %v2043_v21 }
 0x354   : > { %v1926_v27 = vadd.f32 %v5600_v26, %v1925_v22  ;;  %v1966_v28 = vadd.f32 %v5600_v26, %v1965_v23 }
 0x356   : > { %v4584_v29 = vpack.c.bf16 %v1926_v27, %v1924_v24  ;;  %v4624_v30 = vpack.c.bf16 %v1966_v28, %v1964_v25 }
 0x358   : > { %4731 = vst [vmem:[#allocation3 + $0x30] sm:$0xff] %v4584_v29  }
 0x359   : > { %4739 = vst [vmem:[#allocation3 + $0x8] sm:$0xff] %v4624_v30  }
 0x35a   : > { %v2005_v31 = vpop.f32.mrf.mxu2  ;;  %v2045_v32 = vpop.f32.mrf.mxu3 }
 0x35b   : > { %v2006_v35 = vadd.f32 %v5600_v26, %v2005_v31  ;;  %v2046_v36 = vadd.f32 %v5600_v26, %v2045_v32  ;;  %v1928_v37 = vpop.f32.mrf.mxu0  ;;  %v1968_v38 = vpop.f32.mrf.mxu1 }
 0x35c   : > { %v1929_v45 = vadd.f32 %v5600_v26, %v1928_v37  ;;  %v1969_v46 = vadd.f32 %v5600_v26, %v1968_v38 }
 0x35d   : > { %v4664_v39 = vpack.c.bf16 %v2006_v35, %v2004_v33  ;;  %v4704_v40 = vpack.c.bf16 %v2046_v36, %v2044_v34 }
 0x35f   : > { %4747 = vst [vmem:[#allocation3 + $0x70] sm:$0xff] %v4664_v39  }
 0x360   : > { %4755 = vst [vmem:[#allocation3 + $0x20] sm:$0xff] %v4704_v40  }
 0x362   : > { %v2008_v41 = vpop.f32.mrf.mxu2  ;;  %v2048_v42 = vpop.f32.mrf.mxu3 }
 0x363   : > { %v1930_v43 = vpop.f32.mrf.mxu0  ;;  %v1970_v44 = vpop.f32.mrf.mxu1  ;;  %v2009_v53 = vadd.f32 %v5600_v26, %v2008_v41  ;;  %v2049_v54 = vadd.f32 %v5600_v26, %v2048_v42 }
 0x364   : > { %v1931_v47 = vadd.f32 %v5600_v26, %v1930_v43  ;;  %v1971_v48 = vadd.f32 %v5600_v26, %v1970_v44 }
 0x366   : > { %v4589_v49 = vpack.c.bf16 %v1931_v47, %v1929_v45  ;;  %v4629_v50 = vpack.c.bf16 %v1971_v48, %v1969_v46 }
 0x368   : > { %4732 = vst [vmem:[#allocation3 + $0x48] sm:$0xff] %v4589_v49  }
 0x369   : > { %4740 = vst [vmem:[#allocation3 + $0x78] sm:$0xff] %v4629_v50  }
 0x36a   : > { %v2010_v51 = vpop.f32.mrf.mxu2  ;;  %v2050_v52 = vpop.f32.mrf.mxu3 }
 0x36b   : > { %v2011_v55 = vadd.f32 %v5600_v26, %v2010_v51  ;;  %v2051_v56 = vadd.f32 %v5600_v26, %v2050_v52 }
 0x36d   : > { %v4669_v57 = vpack.c.bf16 %v2011_v55, %v2009_v53  ;;  %v4709_v58 = vpack.c.bf16 %v2051_v56, %v2049_v54 }
 0x36f   : > { %4748 = vst [vmem:[#allocation3 + $0xc0] sm:$0xff] %v4669_v57  }
 0x370   : > { %4756 = vst [vmem:[#allocation3 + $0x98] sm:$0xff] %v4709_v58  }
 0x371 PF: > { %p3847_p12 = scmp.ne.s32.totalorder %s4850_s16, 1 }
 0x372   : > { %s2184_s16 = sshra.s32 (!%p3847_p12), %s3298_s23, 3 }
 0x373   : > { %2183 = sbr.rel (%p3847_p12) target bundleno = 1306 (0x51a), region = 67  ;;  %s4374_s6 = sshll.u32 (!%p3847_p12), %s2184_s16, 4 }
 0x374   : > { %s5669_s15 = scalar_lea.vmem (!%p3847_p12), [#allocation4], %s4374_s6 }
 0x378   : > { %v4446_v59 = vld [vmem:[#allocation3 + $0x48] sm:$0xff]  ;;  %v4454_v60 = vld [vmem:[#allocation3 + $0x78] sm:$0xff]  ;;  %v4462_v61 = vld [vmem:[#allocation3 + $0xc0] sm:$0xff] }
 0x379   : > { %v4470_v62 = vld [vmem:[#allocation3 + $0x98] sm:$0xff]  ;;  %2829 = vmatpush.bf16.msra.mxu0 %v4446_v59  ;;  %2918 = vmatpush.bf16.msra.mxu1 %v4454_v60  ;;  %v4445_v63 = vld [vmem:[#allocation3 + $0x30] sm:$0xff]  ;;  %v4453_v0 = vld [vmem:[#allocation3 + $0x8] sm:$0xff] }
 0x37a   : > { %3007 = vmatpush.bf16.msra.mxu2 %v4462_v61  ;;  %3096 = vmatpush.bf16.msra.mxu3 %v4470_v62  ;;  %v4461_v1 = vld [vmem:[#allocation3 + $0x70] sm:$0xff]  ;;  %v4469_v26 = vld [vmem:[#allocation3 + $0x20] sm:$0xff]  ;;  %v4444_v2 = vld [vmem:[#allocation3 + $0x68] sm:$0xff] }
 0x37b   : > { %v4452_v3 = vld [vmem:[#allocation3 + $0xf0] sm:$0xff]  ;;  %v4468_v5 = vld [vmem:[#allocation3 + $0xf8] sm:$0xff]  ;;  %v4451_v7 = vld [vmem:[#allocation3 + $0x60] sm:$0xff] }
 0x37c   : > { %v4460_v4 = vld [vmem:[#allocation3 + $0x90] sm:$0xff]  ;;  %v4459_v8 = vld [vmem:[#allocation3 + $0xe0] sm:$0xff]  ;;  %v4442_v10 = vld [vmem:[#allocation3 + $0x18] sm:$0xff] }
 0x37d   : > { %2830 = vmatpush.bf16.msra.mxu0 %v4445_v63  ;;  %2919 = vmatpush.bf16.msra.mxu1 %v4453_v0  ;;  %v4443_v6 = vld [vmem:[#allocation3 + $0x50] sm:$0xff]  ;;  %v4467_v9 = vld [vmem:[#allocation3 + $0xa0] sm:$0xff]  ;;  %v4450_v11 = vld [vmem:[#allocation3 + $0xb8] sm:$0xff] }
 0x37e   : > { %3008 = vmatpush.bf16.msra.mxu2 %v4461_v1  ;;  %3097 = vmatpush.bf16.msra.mxu3 %v4469_v26  ;;  %v4458_v12 = vld [vmem:[#allocation3 + $0xc8] sm:$0xff]  ;;  %v4441_v14 = vld [vmem:[#allocation3 + $0xd8] sm:$0xff]  ;;  %v4457_v16 = vld [vmem:[#allocation3 + $0x40] sm:$0xff] }
 0x37f   : > { %v4466_v13 = vld [vmem:[#allocation3 + $0x28] sm:$0xff]  ;;  %v4465_v17 = vld [vmem:[#allocation3 + $0x10] sm:$0xff]  ;;  %v4440_v18 = vld [vmem:[#allocation3] sm:$0xff] }
 0x380   : > { %v4449_v15 = vld [vmem:[#allocation3 + $0xe8] sm:$0xff]  ;;  %v4456_v20 = vld [vmem:[#allocation3 + $0x58] sm:$0xff]  ;;  %v4464_v21 = vld [vmem:[#allocation3 + $0xd0] sm:$0xff] }
 0x381   : > { %2831 = vmatpush.bf16.msra.mxu0 %v4444_v2  ;;  %2920 = vmatpush.bf16.msra.mxu1 %v4452_v3  ;;  %v4448_v19 = vld [vmem:[#allocation3 + $0x88] sm:$0xff]  ;;  %v4439_v22 = vld [vmem:[#allocation3 + $0xb0] sm:$0xff]  ;;  %v4447_v23 = vld [vmem:[#allocation3 + $0x80] sm:$0xff] }
 0x382   : > { %3009 = vmatpush.bf16.msra.mxu2 %v4460_v4  ;;  %3098 = vmatpush.bf16.msra.mxu3 %v4468_v5  ;;  %v4455_v24 = vld [vmem:[#allocation3 + $0x38] sm:$0xff]  ;;  %v4463_v25 = vld [vmem:[#allocation3 + $0xa8] sm:$0xff]  ;;  %v3852_v27 = vld [vmem:[%s5669_s15] sm:$0xf] }
 0x383   : > { %v4377_v28 = vld [vmem:[%s5669_s15 + $0xc] sm:$0xf0]  ;;  %v4375_v29 = vld [vmem:[%s5669_s15 + $0x4] sm:$0xf]  ;;  %v3854_v30 = vld [vmem:[%s5669_s15 + $0x10] sm:$0xf0] }
 0x384   : > { %v3860_v31 = vld [vmem:[%s5669_s15 + $0x8] sm:$0xf]  ;;  %v4378_v32 = vld [vmem:[%s5669_s15 + $0x14] sm:$0xf0]  ;;  %v4376_v33 = vld [vmem:[%s5669_s15 + $0xc] sm:$0xf]  ;;  %v3853_v35 = vor.u32 %v4377_v28, %v3852_v27  ;;  %v3857_v36 = vor.u32 %v4375_v29, %v3854_v30 }
 0x385   : > { %2832 = vmatpush.bf16.msra.mxu0 %v4443_v6  ;;  %2921 = vmatpush.bf16.msra.mxu1 %v4451_v7  ;;  %v3862_v34 = vld [vmem:[%s5669_s15 + $0x18] sm:$0xf0]  ;;  %v3861_v37 = vor.u32 %v4378_v32, %v3860_v31  ;;  %v3868_v39 = vld [vmem:[%s5669_s15 + $0x20] sm:$0xf]  ;;  %v4381_v40 = vld [vmem:[%s5669_s15 + $0x2c] sm:$0xf0] }
 0x386   : > { %3010 = vmatpush.bf16.msra.mxu2 %v4459_v8  ;;  %3099 = vmatpush.bf16.msra.mxu3 %v4467_v9  ;;  %v3865_v38 = vor.u32 %v4376_v33, %v3862_v34  ;;  %v4379_v41 = vld [vmem:[%s5669_s15 + $0x24] sm:$0xf]  ;;  %v3870_v42 = vld [vmem:[%s5669_s15 + $0x30] sm:$0xf0]  ;;  %v3876_v43 = vld [vmem:[%s5669_s15 + $0x28] sm:$0xf]  ;;  %v3869_v47 = vor.u32 %v4381_v40, %v3868_v39 }
 0x387   : > { %v4382_v44 = vld [vmem:[%s5669_s15 + $0x34] sm:$0xf0]  ;;  %v4380_v45 = vld [vmem:[%s5669_s15 + $0x2c] sm:$0xf]  ;;  %v3878_v46 = vld [vmem:[%s5669_s15 + $0x38] sm:$0xf0]  ;;  %v3873_v48 = vor.u32 %v4379_v41, %v3870_v42 }
 0x388   : > { %v3877_v49 = vor.u32 %v4382_v44, %v3876_v43  ;;  %v3881_v50 = vor.u32 %v4380_v45, %v3878_v46  ;;  %v3884_v51 = vld [vmem:[%s5669_s15 + $0x40] sm:$0xf]  ;;  %v4385_v52 = vld [vmem:[%s5669_s15 + $0x4c] sm:$0xf0]  ;;  %v4383_v53 = vld [vmem:[%s5669_s15 + $0x44] sm:$0xf] }
 0x389   : > { %2833 = vmatpush.bf16.msra.mxu0 %v4442_v10  ;;  %2922 = vmatpush.bf16.msra.mxu1 %v4450_v11  ;;  %v3886_v54 = vld [vmem:[%s5669_s15 + $0x50] sm:$0xf0]  ;;  %v3892_v55 = vld [vmem:[%s5669_s15 + $0x48] sm:$0xf]  ;;  %v4386_v56 = vld [vmem:[%s5669_s15 + $0x54] sm:$0xf0]  ;;  %v3885_v59 = vor.u32 %v4385_v52, %v3884_v51 }
 0x38a   : > { %3011 = vmatpush.bf16.msra.mxu2 %v4458_v12  ;;  %3100 = vmatpush.bf16.msra.mxu3 %v4466_v13  ;;  %v4384_v57 = vld [vmem:[%s5669_s15 + $0x4c] sm:$0xf]  ;;  %v3894_v58 = vld [vmem:[%s5669_s15 + $0x58] sm:$0xf0]  ;;  %v3889_v60 = vor.u32 %v4383_v53, %v3886_v54  ;;  %v3893_v61 = vor.u32 %v4386_v56, %v3892_v55  ;;  %v3900_v63 = vld [vmem:[%s5669_s15 + $0x60] sm:$0xf] }
 0x38b   : > { %v3897_v62 = vor.u32 %v4384_v57, %v3894_v58  ;;  %v4389_v0 = vld [vmem:[%s5669_s15 + $0x6c] sm:$0xf0]  ;;  %v4387_v1 = vld [vmem:[%s5669_s15 + $0x64] sm:$0xf]  ;;  %v3902_v26 = vld [vmem:[%s5669_s15 + $0x70] sm:$0xf0] }
 0x38c   : > { %v3908_v2 = vld [vmem:[%s5669_s15 + $0x68] sm:$0xf]  ;;  %v4390_v3 = vld [vmem:[%s5669_s15 + $0x74] sm:$0xf0]  ;;  %v4388_v4 = vld [vmem:[%s5669_s15 + $0x6c] sm:$0xf]  ;;  %v3901_v6 = vor.u32 %v4389_v0, %v3900_v63  ;;  %v3905_v7 = vor.u32 %v4387_v1, %v3902_v26 }
 0x38d   : > { %2834 = vmatpush.bf16.msra.mxu0 %v4441_v14  ;;  %2923 = vmatpush.bf16.msra.mxu1 %v4449_v15  ;;  %v3910_v5 = vld [vmem:[%s5669_s15 + $0x78] sm:$0xf0]  ;;  %v3909_v8 = vor.u32 %v4390_v3, %v3908_v2  ;;  %v3916_v10 = vld [vmem:[%s5669_s15 + $0x80] sm:$0xf]  ;;  %v4393_v11 = vld [vmem:[%s5669_s15 + $0x8c] sm:$0xf0] }
 0x38e   : > { %3012 = vmatpush.bf16.msra.mxu2 %v4457_v16  ;;  %3101 = vmatpush.bf16.msra.mxu3 %v4465_v17  ;;  %v3913_v9 = vor.u32 %v4388_v4, %v3910_v5  ;;  %v4391_v12 = vld [vmem:[%s5669_s15 + $0x84] sm:$0xf]  ;;  %v3918_v13 = vld [vmem:[%s5669_s15 + $0x90] sm:$0xf0]  ;;  %v3924_v14 = vld [vmem:[%s5669_s15 + $0x88] sm:$0xf] }
 0x38f   : > { %v4394_v15 = vld [vmem:[%s5669_s15 + $0x94] sm:$0xf0]  ;;  %v4392_v16 = vld [vmem:[%s5669_s15 + $0x8c] sm:$0xf]  ;;  %v3926_v17 = vld [vmem:[%s5669_s15 + $0x98] sm:$0xf0] }
 0x390   : > { %v3940_v27 = vld [vmem:[%s5669_s15 + $0xa8] sm:$0xf]  ;;  %v4398_v28 = vld [vmem:[%s5669_s15 + $0xb4] sm:$0xf0]  ;;  %v4396_v29 = vld [vmem:[%s5669_s15 + $0xac] sm:$0xf] }
 0x391   : > { %2835 = vmatpush.bf16.msra.mxu0 %v4440_v18  ;;  %2924 = vmatpush.bf16.msra.mxu1 %v4448_v19  ;;  %v3917_v18 = vor.u32 %v4393_v11, %v3916_v10  ;;  %v3921_v19 = vor.u32 %v4391_v12, %v3918_v13  ;;  %v3942_v30 = vld [vmem:[%s5669_s15 + $0xb8] sm:$0xf0]  ;;  %v3941_v33 = vor.u32 %v4398_v28, %v3940_v27  ;;  %v3956_v39 = vld [vmem:[%s5669_s15 + $0xc8] sm:$0xf]  ;;  %v4402_v40 = vld [vmem:[%s5669_s15 + $0xd4] sm:$0xf0] }
 0x392   : > { %3013 = vmatpush.bf16.msra.mxu2 %v4456_v20  ;;  %3102 = vmatpush.bf16.msra.mxu3 %v4464_v21  ;;  %v3925_v20 = vor.u32 %v4394_v15, %v3924_v14  ;;  %v3929_v21 = vor.u32 %v4392_v16, %v3926_v17  ;;  %v3945_v34 = vor.u32 %v4396_v29, %v3942_v30  ;;  %v4400_v41 = vld [vmem:[%s5669_s15 + $0xcc] sm:$0xf]  ;;  %v3958_v42 = vld [vmem:[%s5669_s15 + $0xd8] sm:$0xf0]  ;;  %v3972_v51 = vld [vmem:[%s5669_s15 + $0xe8] sm:$0xf] }
 0x393   : > { %v3957_v45 = vor.u32 %v4402_v40, %v3956_v39  ;;  %v3961_v46 = vor.u32 %v4400_v41, %v3958_v42  ;;  %v4406_v52 = vld [vmem:[%s5669_s15 + $0xf4] sm:$0xf0]  ;;  %v4404_v53 = vld [vmem:[%s5669_s15 + $0xec] sm:$0xf]  ;;  %v3974_v54 = vld [vmem:[%s5669_s15 + $0xf8] sm:$0xf0] }
 0x394   : > { %v3973_v57 = vor.u32 %v4406_v52, %v3972_v51  ;;  %v3977_v58 = vor.u32 %v4404_v53, %v3974_v54  ;;  %v3988_v63 = vld [vmem:[%s5669_s15 + $0x108] sm:$0xf]  ;;  %v4410_v0 = vld [vmem:[%s5669_s15 + $0x114] sm:$0xf0]  ;;  %v4408_v1 = vld [vmem:[%s5669_s15 + $0x10c] sm:$0xf] }
 0x395   : > { %2836 = vmatpush.bf16.msra.mxu0 %v4439_v22  ;;  %2925 = vmatpush.bf16.msra.mxu1 %v4447_v23  ;;  %v3932_v22 = vld [vmem:[%s5669_s15 + $0xa0] sm:$0xf]  ;;  %v4397_v23 = vld [vmem:[%s5669_s15 + $0xac] sm:$0xf0]  ;;  %v3990_v26 = vld [vmem:[%s5669_s15 + $0x118] sm:$0xf0] }
 0x396   : > { %3014 = vmatpush.bf16.msra.mxu2 %v4455_v24  ;;  %3103 = vmatpush.bf16.msra.mxu3 %v4463_v25  ;;  %v4395_v24 = vld [vmem:[%s5669_s15 + $0xa4] sm:$0xf]  ;;  %v3934_v25 = vld [vmem:[%s5669_s15 + $0xb0] sm:$0xf0]  ;;  %v3933_v31 = vor.u32 %v4397_v23, %v3932_v22  ;;  %v3996_v15 = vld [vmem:[%s5669_s15 + $0x120] sm:$0xf] }
 0x397   : > { %v3937_v32 = vor.u32 %v4395_v24, %v3934_v25  ;;  %v4413_v16 = vld [vmem:[%s5669_s15 + $0x12c] sm:$0xf0]  ;;  %v4411_v17 = vld [vmem:[%s5669_s15 + $0x124] sm:$0xf]  ;;  %v4006_v22 = vld [vmem:[%s5669_s15 + $0x138] sm:$0xf0] }
 0x398   : > { %2837 = vmatmul.bf16.vlgmr.msra.gmra.mxu0 %v3853_v35  ;;  %2926 = vmatmul.bf16.vlgmr.msra.gmra.mxu1 %v3857_v36  ;;  %v3948_v35 = vld [vmem:[%s5669_s15 + $0xc0] sm:$0xf]  ;;  %v4401_v36 = vld [vmem:[%s5669_s15 + $0xcc] sm:$0xf0]  ;;  %v3997_v27 = vor.u32 %v4413_v16, %v3996_v15 }
 0x399   : > { %3015 = vmatmul.bf16.vlgmr.msra.gmra.mxu2 %v3861_v37  ;;  %3104 = vmatmul.bf16.vlgmr.msra.gmra.mxu3 %v3865_v38  ;;  %v4399_v37 = vld [vmem:[%s5669_s15 + $0xc4] sm:$0xf]  ;;  %v3950_v38 = vld [vmem:[%s5669_s15 + $0xd0] sm:$0xf0]  ;;  %v3949_v43 = vor.u32 %v4401_v36, %v3948_v35  ;;  %v4012_v42 = vld [vmem:[%s5669_s15 + $0x140] sm:$0xf] }
 0x39a   : > { %v3953_v44 = vor.u32 %v4399_v37, %v3950_v38 }
 0x3a8   : > { %2842 = vmatmul.bf16.gmra.mxu0 %v3869_v47  ;;  %2931 = vmatmul.bf16.gmra.mxu1 %v3873_v48  ;;  %v3964_v47 = vld [vmem:[%s5669_s15 + $0xe0] sm:$0xf]  ;;  %v4405_v48 = vld [vmem:[%s5669_s15 + $0xec] sm:$0xf0] }
 0x3a9   : > { %3020 = vmatmul.bf16.gmra.mxu2 %v3877_v49  ;;  %3109 = vmatmul.bf16.gmra.mxu3 %v3881_v50  ;;  %v4403_v49 = vld [vmem:[%s5669_s15 + $0xe4] sm:$0xf]  ;;  %v3966_v50 = vld [vmem:[%s5669_s15 + $0xf0] sm:$0xf0]  ;;  %v3965_v55 = vor.u32 %v4405_v48, %v3964_v47  ;;  %v4418_v47 = vld [vmem:[%s5669_s15 + $0x154] sm:$0xf0] }
 0x3aa   : > { %v3969_v56 = vor.u32 %v4403_v49, %v3966_v50  ;;  %v4416_v48 = vld [vmem:[%s5669_s15 + $0x14c] sm:$0xf]  ;;  %v4022_v49 = vld [vmem:[%s5669_s15 + $0x158] sm:$0xf0] }
 0x3b8   : > { %2847 = vmatmul.bf16.gmra.mxu0 %v3885_v59  ;;  %2936 = vmatmul.bf16.gmra.mxu1 %v3889_v60  ;;  %v3980_v59 = vld [vmem:[%s5669_s15 + $0x100] sm:$0xf]  ;;  %v4409_v60 = vld [vmem:[%s5669_s15 + $0x10c] sm:$0xf0] }
 0x3b9   : > { %3025 = vmatmul.bf16.gmra.mxu2 %v3893_v61  ;;  %3114 = vmatmul.bf16.gmra.mxu3 %v3897_v62  ;;  %v4407_v61 = vld [vmem:[%s5669_s15 + $0x104] sm:$0xf]  ;;  %v3982_v62 = vld [vmem:[%s5669_s15 + $0x110] sm:$0xf0]  ;;  %v3981_v2 = vor.u32 %v4409_v60, %v3980_v59  ;;  %v4025_v59 = vor.u32 %v4416_v48, %v4022_v49 }
 0x3ba   : > { %v3985_v3 = vor.u32 %v4407_v61, %v3982_v62 }
 0x3c8   : > { %2852 = vmatmul.bf16.gmra.mxu0 %v3901_v6  ;;  %2941 = vmatmul.bf16.gmra.mxu1 %v3905_v7  ;;  %v3989_v6 = vor.u32 %v4410_v0, %v3988_v63  ;;  %v3993_v7 = vor.u32 %v4408_v1, %v3990_v26 }
 0x3c9   : > { %3030 = vmatmul.bf16.gmra.mxu2 %v3909_v8  ;;  %3119 = vmatmul.bf16.gmra.mxu3 %v3913_v9 }
 0x3d8   : > { %2857 = vmatmul.bf16.gmra.mxu0 %v3917_v18  ;;  %2946 = vmatmul.bf16.gmra.mxu1 %v3921_v19  ;;  %v3998_v18 = vld [vmem:[%s5669_s15 + $0x130] sm:$0xf0]  ;;  %v4004_v19 = vld [vmem:[%s5669_s15 + $0x128] sm:$0xf] }
 0x3d9   : > { %3035 = vmatmul.bf16.gmra.mxu2 %v3925_v20  ;;  %3124 = vmatmul.bf16.gmra.mxu3 %v3929_v21  ;;  %v4414_v20 = vld [vmem:[%s5669_s15 + $0x134] sm:$0xf0]  ;;  %v4412_v21 = vld [vmem:[%s5669_s15 + $0x12c] sm:$0xf]  ;;  %v4001_v28 = vor.u32 %v4411_v17, %v3998_v18 }
 0x3e8   : > { %2862 = vmatmul.bf16.gmra.mxu0 %v3933_v31  ;;  %2951 = vmatmul.bf16.gmra.mxu1 %v3937_v32  ;;  %v4005_v32 = vor.u32 %v4414_v20, %v4004_v19 }
 0x3e9   : > { %3040 = vmatmul.bf16.gmra.mxu2 %v3941_v33  ;;  %3129 = vmatmul.bf16.gmra.mxu3 %v3945_v34  ;;  %v4009_v33 = vor.u32 %v4412_v21, %v4006_v22 }
 0x3f8   : > { %2867 = vmatmul.bf16.gmra.mxu0 %v3949_v43  ;;  %2956 = vmatmul.bf16.gmra.mxu1 %v3953_v44  ;;  %v4417_v43 = vld [vmem:[%s5669_s15 + $0x14c] sm:$0xf0]  ;;  %v4415_v44 = vld [vmem:[%s5669_s15 + $0x144] sm:$0xf] }
 0x3f9   : > { %3045 = vmatmul.bf16.gmra.mxu2 %v3957_v45  ;;  %3134 = vmatmul.bf16.gmra.mxu3 %v3961_v46  ;;  %v4014_v45 = vld [vmem:[%s5669_s15 + $0x150] sm:$0xf0]  ;;  %v4020_v46 = vld [vmem:[%s5669_s15 + $0x148] sm:$0xf]  ;;  %v4013_v53 = vor.u32 %v4417_v43, %v4012_v42 }
 0x3fa   : > { %v4017_v54 = vor.u32 %v4415_v44, %v4014_v45 }
 0x408   : > { %2872 = vmatmul.bf16.gmra.mxu0 %v3965_v55  ;;  %2961 = vmatmul.bf16.gmra.mxu1 %v3969_v56 }
 0x409   : > { %3050 = vmatmul.bf16.gmra.mxu2 %v3973_v57  ;;  %3139 = vmatmul.bf16.gmra.mxu3 %v3977_v58  ;;  %v4021_v58 = vor.u32 %v4418_v47, %v4020_v46 }
 0x415   : > { %v2838_v4 = vpop.f32.mrf.mxu0  ;;  %v2927_v5 = vpop.f32.mrf.mxu1 }
 0x416   : > { %v2928_v8 = vadd.f32 %v2927_v5, %v2838_v4  ;;  %v4421_v4 = vld [vmem:[%s5669_s15 + $0x16c] sm:$0xf0]  ;;  %v4419_v5 = vld [vmem:[%s5669_s15 + $0x164] sm:$0xf] }
 0x418   : > { %2877 = vmatmul.bf16.gmra.mxu0 %v3981_v2  ;;  %2966 = vmatmul.bf16.gmra.mxu1 %v3985_v3  ;;  %v4028_v3 = vld [vmem:[%s5669_s15 + $0x160] sm:$0xf] }
 0x419   : > { %3055 = vmatmul.bf16.gmra.mxu2 %v3989_v6  ;;  %3144 = vmatmul.bf16.gmra.mxu3 %v3993_v7  ;;  %v4030_v6 = vld [vmem:[%s5669_s15 + $0x170] sm:$0xf0]  ;;  %v4036_v7 = vld [vmem:[%s5669_s15 + $0x168] sm:$0xf] }
 0x41a   : > { %v4033_v15 = vor.u32 %v4419_v5, %v4030_v6 }
 0x41c   : > { %v3016_v9 = vpop.f32.mrf.mxu2  ;;  %v3105_v10 = vpop.f32.mrf.mxu3 }
 0x41d   : > { %v3017_v11 = vadd.f32 %v3016_v9, %v2928_v8  ;;  %v2840_v12 = vpop.f32.mrf.mxu0  ;;  %v2929_v13 = vpop.f32.mrf.mxu1  ;;  %v4422_v8 = vld [vmem:[%s5669_s15 + $0x174] sm:$0xf0]  ;;  %v4420_v9 = vld [vmem:[%s5669_s15 + $0x16c] sm:$0xf] }
 0x41e   : > { %v2930_v23 = vadd.f32 %v2929_v13, %v2840_v12  ;;  %v4037_v19 = vor.u32 %v4422_v8, %v4036_v7 }
 0x41f   : > { %v3106_v14 = vadd.f32 %v3105_v10, %v3017_v11  ;;  %v4038_v10 = vld [vmem:[%s5669_s15 + $0x178] sm:$0xf0] }
 0x420   : > { %v4041_v20 = vor.u32 %v4420_v9, %v4038_v10 }
 0x421   : > { %3185 = vst [vmem:[%s4933_s28] sm:$0xff] %v3106_v14  ;;  %v4029_v14 = vor.u32 %v4421_v4, %v4028_v3 }
 0x424   : > { %v3018_v24 = vpop.f32.mrf.mxu2  ;;  %v3107_v25 = vpop.f32.mrf.mxu3 }
 0x425   : > { %v3019_v29 = vadd.f32 %v3018_v24, %v2930_v23  ;;  %v2843_v30 = vpop.f32.mrf.mxu0  ;;  %v2932_v31 = vpop.f32.mrf.mxu1 }
 0x426   : > { %v2933_v35 = vadd.f32 %v2932_v31, %v2843_v30  ;;  %v4044_v30 = vld [vmem:[%s5669_s15 + $0x180] sm:$0xf]  ;;  %v4425_v31 = vld [vmem:[%s5669_s15 + $0x18c] sm:$0xf0] }
 0x427   : > { %v3108_v34 = vadd.f32 %v3107_v25, %v3019_v29 }
 0x428   : > { %2882 = vmatmul.bf16.gmra.mxu0 %v3997_v27  ;;  %2971 = vmatmul.bf16.gmra.mxu1 %v4001_v28 }
 0x429   : > { %3186 = vst [vmem:[%s4933_s28 + $0x8] sm:$0xff] %v3108_v34  ;;  %3060 = vmatmul.bf16.gmra.mxu2 %v4005_v32  ;;  %3149 = vmatmul.bf16.gmra.mxu3 %v4009_v33  ;;  %v4423_v32 = vld [vmem:[%s5669_s15 + $0x184] sm:$0xf]  ;;  %v4046_v33 = vld [vmem:[%s5669_s15 + $0x190] sm:$0xf0] }
 0x42a   : > { %v4052_v34 = vld [vmem:[%s5669_s15 + $0x188] sm:$0xf]  ;;  %v4049_v42 = vor.u32 %v4423_v32, %v4046_v33 }
 0x42c   : > { %v3021_v36 = vpop.f32.mrf.mxu2  ;;  %v3110_v37 = vpop.f32.mrf.mxu3 }
 0x42d   : > { %v3022_v38 = vadd.f32 %v3021_v36, %v2933_v35  ;;  %v2845_v39 = vpop.f32.mrf.mxu0  ;;  %v2934_v40 = vpop.f32.mrf.mxu1  ;;  %v4426_v35 = vld [vmem:[%s5669_s15 + $0x194] sm:$0xf0]  ;;  %v4424_v36 = vld [vmem:[%s5669_s15 + $0x18c] sm:$0xf] }
 0x42e   : > { %v2935_v50 = vadd.f32 %v2934_v40, %v2845_v39  ;;  %v4053_v46 = vor.u32 %v4426_v35, %v4052_v34 }
 0x42f   : > { %v3111_v41 = vadd.f32 %v3110_v37, %v3022_v38  ;;  %v4054_v37 = vld [vmem:[%s5669_s15 + $0x198] sm:$0xf0] }
 0x430   : > { %v4057_v47 = vor.u32 %v4424_v36, %v4054_v37 }
 0x431   : > { %3187 = vst [vmem:[%s4933_s28 + $0x10] sm:$0xff] %v3111_v41  ;;  %v4045_v41 = vor.u32 %v4425_v31, %v4044_v30 }
 0x434   : > { %v3023_v51 = vpop.f32.mrf.mxu2  ;;  %v3112_v52 = vpop.f32.mrf.mxu3 }
 0x435   : > { %v3024_v55 = vadd.f32 %v3023_v51, %v2935_v50  ;;  %v2848_v56 = vpop.f32.mrf.mxu0  ;;  %v2937_v57 = vpop.f32.mrf.mxu1 }
 0x436   : > { %v2938_v61 = vadd.f32 %v2937_v57, %v2848_v56  ;;  %v4060_v56 = vld [vmem:[%s5669_s15 + $0x1a0] sm:$0xf]  ;;  %v4429_v57 = vld [vmem:[%s5669_s15 + $0x1ac] sm:$0xf0] }
 0x437   : > { %v3113_v60 = vadd.f32 %v3112_v52, %v3024_v55 }
 0x438   : > { %2887 = vmatmul.bf16.gmra.mxu0 %v4013_v53  ;;  %2976 = vmatmul.bf16.gmra.mxu1 %v4017_v54 }
 0x439   : > { %3188 = vst [vmem:[%s4933_s28 + $0x18] sm:$0xff] %v3113_v60  ;;  %3065 = vmatmul.bf16.gmra.mxu2 %v4021_v58  ;;  %3154 = vmatmul.bf16.gmra.mxu3 %v4025_v59  ;;  %v4427_v58 = vld [vmem:[%s5669_s15 + $0x1a4] sm:$0xf]  ;;  %v4062_v59 = vld [vmem:[%s5669_s15 + $0x1b0] sm:$0xf0] }
 0x43a   : > { %v4068_v60 = vld [vmem:[%s5669_s15 + $0x1a8] sm:$0xf]  ;;  %v4065_v3 = vor.u32 %v4427_v58, %v4062_v59 }
 0x43c   : > { %v3026_v62 = vpop.f32.mrf.mxu2  ;;  %v3115_v63 = vpop.f32.mrf.mxu3 }
 0x43d   : > { %v3027_v0 = vadd.f32 %v3026_v62, %v2938_v61  ;;  %v2850_v1 = vpop.f32.mrf.mxu0  ;;  %v2939_v26 = vpop.f32.mrf.mxu1  ;;  %v4430_v61 = vld [vmem:[%s5669_s15 + $0x1b4] sm:$0xf0]  ;;  %v4428_v62 = vld [vmem:[%s5669_s15 + $0x1ac] sm:$0xf] }
 0x43e   : > { %v2940_v11 = vadd.f32 %v2939_v26, %v2850_v1  ;;  %v4069_v7 = vor.u32 %v4430_v61, %v4068_v60 }
 0x43f   : > { %v3116_v2 = vadd.f32 %v3115_v63, %v3027_v0  ;;  %v4070_v63 = vld [vmem:[%s5669_s15 + $0x1b8] sm:$0xf0] }
 0x440   : > { %v4073_v8 = vor.u32 %v4428_v62, %v4070_v63 }
 0x441   : > { %3189 = vst [vmem:[%s4933_s28 + $0x20] sm:$0xff] %v3116_v2  ;;  %v4061_v2 = vor.u32 %v4429_v57, %v4060_v56 }
 0x444   : > { %v3028_v12 = vpop.f32.mrf.mxu2  ;;  %v3117_v13 = vpop.f32.mrf.mxu3 }
 0x445   : > { %v3029_v16 = vadd.f32 %v3028_v12, %v2940_v11  ;;  %v2853_v17 = vpop.f32.mrf.mxu0  ;;  %v2942_v18 = vpop.f32.mrf.mxu1 }
 0x446   : > { %v2943_v22 = vadd.f32 %v2942_v18, %v2853_v17  ;;  %v4076_v17 = vld [vmem:[%s5669_s15 + $0x1c0] sm:$0xf]  ;;  %v4433_v18 = vld [vmem:[%s5669_s15 + $0x1cc] sm:$0xf0] }
 0x447   : > { %v3118_v21 = vadd.f32 %v3117_v13, %v3029_v16 }
 0x448   : > { %2892 = vmatmul.bf16.gmra.mxu0 %v4029_v14  ;;  %2981 = vmatmul.bf16.gmra.mxu1 %v4033_v15 }
 0x449   : > { %3190 = vst [vmem:[%s4933_s28 + $0x28] sm:$0xff] %v3118_v21  ;;  %3070 = vmatmul.bf16.gmra.mxu2 %v4037_v19  ;;  %3159 = vmatmul.bf16.gmra.mxu3 %v4041_v20  ;;  %v4431_v19 = vld [vmem:[%s5669_s15 + $0x1c4] sm:$0xf]  ;;  %v4078_v20 = vld [vmem:[%s5669_s15 + $0x1d0] sm:$0xf0] }
 0x44a   : > { %v4084_v21 = vld [vmem:[%s5669_s15 + $0x1c8] sm:$0xf]  ;;  %v4081_v30 = vor.u32 %v4431_v19, %v4078_v20 }
 0x44c   : > { %v3031_v23 = vpop.f32.mrf.mxu2  ;;  %v3120_v24 = vpop.f32.mrf.mxu3 }
 0x44d   : > { %v3032_v25 = vadd.f32 %v3031_v23, %v2943_v22  ;;  %v2855_v27 = vpop.f32.mrf.mxu0  ;;  %v2944_v28 = vpop.f32.mrf.mxu1  ;;  %v4434_v22 = vld [vmem:[%s5669_s15 + $0x1d4] sm:$0xf0]  ;;  %v4432_v23 = vld [vmem:[%s5669_s15 + $0x1cc] sm:$0xf] }
 0x44e   : > { %v2945_v38 = vadd.f32 %v2944_v28, %v2855_v27  ;;  %v4085_v34 = vor.u32 %v4434_v22, %v4084_v21 }
 0x44f   : > { %v3121_v29 = vadd.f32 %v3120_v24, %v3032_v25  ;;  %v4086_v24 = vld [vmem:[%s5669_s15 + $0x1d8] sm:$0xf0] }
 0x450   : > { %v4089_v35 = vor.u32 %v4432_v23, %v4086_v24 }
 0x451   : > { %3191 = vst [vmem:[%s4933_s28 + $0x30] sm:$0xff] %v3121_v29  ;;  %v4077_v29 = vor.u32 %v4433_v18, %v4076_v17 }
 0x454   : > { %v3033_v39 = vpop.f32.mrf.mxu2  ;;  %v3122_v40 = vpop.f32.mrf.mxu3 }
 0x455   : > { %v3034_v43 = vadd.f32 %v3033_v39, %v2945_v38  ;;  %v2858_v44 = vpop.f32.mrf.mxu0  ;;  %v2947_v45 = vpop.f32.mrf.mxu1 }
 0x456   : > { %v2948_v49 = vadd.f32 %v2947_v45, %v2858_v44  ;;  %v4092_v44 = vld [vmem:[%s5669_s15 + $0x1e0] sm:$0xf]  ;;  %v4437_v45 = vld [vmem:[%s5669_s15 + $0x1ec] sm:$0xf0] }
 0x457   : > { %v3123_v48 = vadd.f32 %v3122_v40, %v3034_v43 }
 0x458   : > { %2897 = vmatmul.bf16.gmra.mxu0 %v4045_v41  ;;  %2986 = vmatmul.bf16.gmra.mxu1 %v4049_v42 }
 0x459   : > { %3192 = vst [vmem:[%s4933_s28 + $0x38] sm:$0xff] %v3123_v48  ;;  %3075 = vmatmul.bf16.gmra.mxu2 %v4053_v46  ;;  %3164 = vmatmul.bf16.gmra.mxu3 %v4057_v47  ;;  %v4435_v46 = vld [vmem:[%s5669_s15 + $0x1e4] sm:$0xf]  ;;  %v4094_v47 = vld [vmem:[%s5669_s15 + $0x1f0] sm:$0xf0] }
 0x45a   : > { %v4100_v48 = vld [vmem:[%s5669_s15 + $0x1e8] sm:$0xf]  ;;  %v4097_v56 = vor.u32 %v4435_v46, %v4094_v47 }
 0x45c   : > { %v3036_v50 = vpop.f32.mrf.mxu2  ;;  %v3125_v51 = vpop.f32.mrf.mxu3 }
 0x45d   : > { %v3037_v52 = vadd.f32 %v3036_v50, %v2948_v49  ;;  %v2860_v53 = vpop.f32.mrf.mxu0  ;;  %v2949_v54 = vpop.f32.mrf.mxu1  ;;  %v4438_v49 = vld [vmem:[%s5669_s15 + $0x1f4] sm:$0xf0]  ;;  %v4436_v50 = vld [vmem:[%s5669_s15 + $0x1ec] sm:$0xf] }
 0x45e   : > { %v2950_v0 = vadd.f32 %v2949_v54, %v2860_v53  ;;  %v4101_v60 = vor.u32 %v4438_v49, %v4100_v48 }
 0x45f   : > { %v3126_v55 = vadd.f32 %v3125_v51, %v3037_v52  ;;  %v4102_v51 = vld [vmem:[%s5669_s15 + $0x1f8] sm:$0xf0] }
 0x460   : > { %v4105_v61 = vor.u32 %v4436_v50, %v4102_v51 }
 0x461   : > { %3193 = vst [vmem:[%s4933_s28 + $0x40] sm:$0xff] %v3126_v55  ;;  %v4093_v55 = vor.u32 %v4437_v45, %v4092_v44 }
 0x464   : > { %v3038_v1 = vpop.f32.mrf.mxu2  ;;  %v3127_v26 = vpop.f32.mrf.mxu3 }
 0x465   : > { %v3039_v4 = vadd.f32 %v3038_v1, %v2950_v0  ;;  %v2863_v5 = vpop.f32.mrf.mxu0  ;;  %v2952_v6 = vpop.f32.mrf.mxu1 }
 0x466   : > { %v2953_v10 = vadd.f32 %v2952_v6, %v2863_v5 }
 0x467   : > { %v3128_v9 = vadd.f32 %v3127_v26, %v3039_v4 }
 0x468   : > { %2902 = vmatmul.bf16.gmra.mxu0 %v4061_v2  ;;  %2991 = vmatmul.bf16.gmra.mxu1 %v4065_v3 }
 0x469   : > { %3194 = vst [vmem:[%s4933_s28 + $0x48] sm:$0xff] %v3128_v9  ;;  %3080 = vmatmul.bf16.gmra.mxu2 %v4069_v7  ;;  %3169 = vmatmul.bf16.gmra.mxu3 %v4073_v8 }
 0x46c   : > { %v3041_v11 = vpop.f32.mrf.mxu2  ;;  %v3130_v12 = vpop.f32.mrf.mxu3 }
 0x46d   : > { %v3042_v13 = vadd.f32 %v3041_v11, %v2953_v10  ;;  %v2865_v14 = vpop.f32.mrf.mxu0  ;;  %v2954_v15 = vpop.f32.mrf.mxu1 }
 0x46e   : > { %v2955_v25 = vadd.f32 %v2954_v15, %v2865_v14 }
 0x46f   : > { %v3131_v16 = vadd.f32 %v3130_v12, %v3042_v13 }
 0x471   : > { %3195 = vst [vmem:[%s4933_s28 + $0x50] sm:$0xff] %v3131_v16 }
 0x474   : > { %v3043_v27 = vpop.f32.mrf.mxu2  ;;  %v3132_v28 = vpop.f32.mrf.mxu3 }
 0x475   : > { %v3044_v31 = vadd.f32 %v3043_v27, %v2955_v25  ;;  %v2868_v32 = vpop.f32.mrf.mxu0  ;;  %v2957_v33 = vpop.f32.mrf.mxu1 }
 0x476   : > { %v2958_v37 = vadd.f32 %v2957_v33, %v2868_v32 }
 0x477   : > { %v3133_v36 = vadd.f32 %v3132_v28, %v3044_v31 }
 0x478   : > { %2907 = vmatmul.bf16.gmra.mxu0 %v4077_v29  ;;  %2996 = vmatmul.bf16.gmra.mxu1 %v4081_v30 }
 0x479   : > { %3196 = vst [vmem:[%s4933_s28 + $0x58] sm:$0xff] %v3133_v36  ;;  %3085 = vmatmul.bf16.gmra.mxu2 %v4085_v34  ;;  %3174 = vmatmul.bf16.gmra.mxu3 %v4089_v35 }
 0x47c   : > { %v3046_v38 = vpop.f32.mrf.mxu2  ;;  %v3135_v39 = vpop.f32.mrf.mxu3 }
 0x47d   : > { %v3047_v40 = vadd.f32 %v3046_v38, %v2958_v37  ;;  %v2870_v41 = vpop.f32.mrf.mxu0  ;;  %v2959_v42 = vpop.f32.mrf.mxu1 }
 0x47e   : > { %v2960_v52 = vadd.f32 %v2959_v42, %v2870_v41 }
 0x47f   : > { %v3136_v43 = vadd.f32 %v3135_v39, %v3047_v40 }
 0x481   : > { %3197 = vst [vmem:[%s4933_s28 + $0x60] sm:$0xff] %v3136_v43 }
 0x484   : > { %v3048_v53 = vpop.f32.mrf.mxu2  ;;  %v3137_v54 = vpop.f32.mrf.mxu3 }
 0x485   : > { %v3049_v57 = vadd.f32 %v3048_v53, %v2960_v52  ;;  %v2873_v58 = vpop.f32.mrf.mxu0  ;;  %v2962_v59 = vpop.f32.mrf.mxu1 }
 0x486   : > { %v2963_v63 = vadd.f32 %v2962_v59, %v2873_v58 }
 0x487   : > { %v3138_v62 = vadd.f32 %v3137_v54, %v3049_v57 }
 0x488   : > { %2912 = vmatmul.bf16.gmra.mxu0 %v4093_v55  ;;  %3001 = vmatmul.bf16.gmra.mxu1 %v4097_v56 }
 0x489   : > { %3198 = vst [vmem:[%s4933_s28 + $0x68] sm:$0xff] %v3138_v62  ;;  %3090 = vmatmul.bf16.gmra.mxu2 %v4101_v60  ;;  %3179 = vmatmul.bf16.gmra.mxu3 %v4105_v61 }
 0x48c   : > { %v3051_v0 = vpop.f32.mrf.mxu2  ;;  %v3140_v1 = vpop.f32.mrf.mxu3 }
 0x48d   : > { %v3052_v26 = vadd.f32 %v3051_v0, %v2963_v63  ;;  %v2875_v2 = vpop.f32.mrf.mxu0  ;;  %v2964_v3 = vpop.f32.mrf.mxu1 }
 0x48e   : > { %v2965_v5 = vadd.f32 %v2964_v3, %v2875_v2 }
 0x48f   : > { %v3141_v4 = vadd.f32 %v3140_v1, %v3052_v26 }
 0x491   : > { %3199 = vst [vmem:[%s4933_s28 + $0x70] sm:$0xff] %v3141_v4 }
 0x494   : > { %v3053_v6 = vpop.f32.mrf.mxu2  ;;  %v3142_v7 = vpop.f32.mrf.mxu3 }
 0x495   : > { %v3054_v8 = vadd.f32 %v3053_v6, %v2965_v5  ;;  %v2878_v9 = vpop.f32.mrf.mxu0  ;;  %v2967_v10 = vpop.f32.mrf.mxu1 }
 0x496   : > { %v2968_v12 = vadd.f32 %v2967_v10, %v2878_v9 }
 0x497   : > { %v3143_v11 = vadd.f32 %v3142_v7, %v3054_v8 }
 0x499   : > { %3200 = vst [vmem:[%s4933_s28 + $0x78] sm:$0xff] %v3143_v11 }
 0x49c   : > { %v3056_v13 = vpop.f32.mrf.mxu2  ;;  %v3145_v14 = vpop.f32.mrf.mxu3 }
 0x49d   : > { %v3057_v15 = vadd.f32 %v3056_v13, %v2968_v12  ;;  %v2880_v16 = vpop.f32.mrf.mxu0  ;;  %v2969_v17 = vpop.f32.mrf.mxu1 }
 0x49e   : > { %v2970_v19 = vadd.f32 %v2969_v17, %v2880_v16 }
 0x49f   : > { %v3146_v18 = vadd.f32 %v3145_v14, %v3057_v15 }
 0x4a1   : > { %3201 = vst [vmem:[%s4933_s28 + $0x80] sm:$0xff] %v3146_v18 }
 0x4a4   : > { %v3058_v20 = vpop.f32.mrf.mxu2  ;;  %v3147_v21 = vpop.f32.mrf.mxu3 }
 0x4a5   : > { %v3059_v22 = vadd.f32 %v3058_v20, %v2970_v19  ;;  %v2883_v23 = vpop.f32.mrf.mxu0  ;;  %v2972_v24 = vpop.f32.mrf.mxu1 }
 0x4a6   : > { %v2973_v27 = vadd.f32 %v2972_v24, %v2883_v23 }
 0x4a7   : > { %v3148_v25 = vadd.f32 %v3147_v21, %v3059_v22 }
 0x4a9   : > { %3202 = vst [vmem:[%s4933_s28 + $0x88] sm:$0xff] %v3148_v25 }
 0x4ac   : > { %v3061_v28 = vpop.f32.mrf.mxu2  ;;  %v3150_v29 = vpop.f32.mrf.mxu3 }
 0x4ad   : > { %v3062_v30 = vadd.f32 %v3061_v28, %v2973_v27  ;;  %v2885_v31 = vpop.f32.mrf.mxu0  ;;  %v2974_v32 = vpop.f32.mrf.mxu1 }
 0x4ae   : > { %v2975_v34 = vadd.f32 %v2974_v32, %v2885_v31 }
 0x4af   : > { %v3151_v33 = vadd.f32 %v3150_v29, %v3062_v30 }
 0x4b1   : > { %3203 = vst [vmem:[%s4933_s28 + $0x90] sm:$0xff] %v3151_v33 }
 0x4b4   : > { %v3063_v35 = vpop.f32.mrf.mxu2  ;;  %v3152_v36 = vpop.f32.mrf.mxu3 }
 0x4b5   : > { %v3064_v37 = vadd.f32 %v3063_v35, %v2975_v34  ;;  %v2888_v38 = vpop.f32.mrf.mxu0  ;;  %v2977_v39 = vpop.f32.mrf.mxu1 }
 0x4b6   : > { %v2978_v41 = vadd.f32 %v2977_v39, %v2888_v38 }
 0x4b7   : > { %v3153_v40 = vadd.f32 %v3152_v36, %v3064_v37 }
 0x4b9   : > { %3204 = vst [vmem:[%s4933_s28 + $0x98] sm:$0xff] %v3153_v40 }
 0x4bc   : > { %v3066_v42 = vpop.f32.mrf.mxu2  ;;  %v3155_v43 = vpop.f32.mrf.mxu3 }
 0x4bd   : > { %v3067_v44 = vadd.f32 %v3066_v42, %v2978_v41  ;;  %v2890_v45 = vpop.f32.mrf.mxu0  ;;  %v2979_v46 = vpop.f32.mrf.mxu1 }
 0x4be   : > { %v2980_v48 = vadd.f32 %v2979_v46, %v2890_v45 }
 0x4bf   : > { %v3156_v47 = vadd.f32 %v3155_v43, %v3067_v44 }
 0x4c1   : > { %3205 = vst [vmem:[%s4933_s28 + $0xa0] sm:$0xff] %v3156_v47 }
 0x4c4   : > { %v3068_v49 = vpop.f32.mrf.mxu2  ;;  %v3157_v50 = vpop.f32.mrf.mxu3 }
 0x4c5   : > { %v3069_v51 = vadd.f32 %v3068_v49, %v2980_v48  ;;  %v2893_v52 = vpop.f32.mrf.mxu0  ;;  %v2982_v53 = vpop.f32.mrf.mxu1 }
 0x4c6   : > { %v2983_v55 = vadd.f32 %v2982_v53, %v2893_v52 }
 0x4c7   : > { %v3158_v54 = vadd.f32 %v3157_v50, %v3069_v51 }
 0x4c9   : > { %3206 = vst [vmem:[%s4933_s28 + $0xa8] sm:$0xff] %v3158_v54 }
 0x4cc   : > { %v3071_v56 = vpop.f32.mrf.mxu2  ;;  %v3160_v57 = vpop.f32.mrf.mxu3 }
 0x4cd   : > { %v3072_v58 = vadd.f32 %v3071_v56, %v2983_v55  ;;  %v2895_v59 = vpop.f32.mrf.mxu0  ;;  %v2984_v60 = vpop.f32.mrf.mxu1 }
 0x4ce   : > { %v2985_v62 = vadd.f32 %v2984_v60, %v2895_v59 }
 0x4cf   : > { %v3161_v61 = vadd.f32 %v3160_v57, %v3072_v58 }
 0x4d1   : > { %3207 = vst [vmem:[%s4933_s28 + $0xb0] sm:$0xff] %v3161_v61 }
 0x4d4   : > { %v3073_v63 = vpop.f32.mrf.mxu2  ;;  %v3162_v0 = vpop.f32.mrf.mxu3 }
 0x4d5   : > { %v3074_v1 = vadd.f32 %v3073_v63, %v2985_v62  ;;  %v2898_v26 = vpop.f32.mrf.mxu0  ;;  %v2987_v2 = vpop.f32.mrf.mxu1 }
 0x4d6   : > { %v2988_v4 = vadd.f32 %v2987_v2, %v2898_v26 }
 0x4d7   : > { %v3163_v3 = vadd.f32 %v3162_v0, %v3074_v1 }
 0x4d9   : > { %3208 = vst [vmem:[%s4933_s28 + $0xb8] sm:$0xff] %v3163_v3 }
 0x4dc   : > { %v3076_v5 = vpop.f32.mrf.mxu2  ;;  %v3165_v6 = vpop.f32.mrf.mxu3 }
 0x4dd   : > { %v3077_v7 = vadd.f32 %v3076_v5, %v2988_v4  ;;  %v2900_v8 = vpop.f32.mrf.mxu0  ;;  %v2989_v9 = vpop.f32.mrf.mxu1 }
 0x4de   : > { %v2990_v11 = vadd.f32 %v2989_v9, %v2900_v8 }
 0x4df   : > { %v3166_v10 = vadd.f32 %v3165_v6, %v3077_v7 }
 0x4e1   : > { %3209 = vst [vmem:[%s4933_s28 + $0xc0] sm:$0xff] %v3166_v10 }
 0x4e4   : > { %v3078_v12 = vpop.f32.mrf.mxu2  ;;  %v3167_v13 = vpop.f32.mrf.mxu3 }
 0x4e5   : > { %v3079_v14 = vadd.f32 %v3078_v12, %v2990_v11  ;;  %v2903_v15 = vpop.f32.mrf.mxu0  ;;  %v2992_v16 = vpop.f32.mrf.mxu1 }
 0x4e6   : > { %v2993_v18 = vadd.f32 %v2992_v16, %v2903_v15 }
 0x4e7   : > { %v3168_v17 = vadd.f32 %v3167_v13, %v3079_v14 }
 0x4e9   : > { %3210 = vst [vmem:[%s4933_s28 + $0xc8] sm:$0xff] %v3168_v17 }
 0x4ec   : > { %v3081_v19 = vpop.f32.mrf.mxu2  ;;  %v3170_v20 = vpop.f32.mrf.mxu3 }
 0x4ed   : > { %v3082_v21 = vadd.f32 %v3081_v19, %v2993_v18  ;;  %v2905_v22 = vpop.f32.mrf.mxu0  ;;  %v2994_v23 = vpop.f32.mrf.mxu1 }
 0x4ee   : > { %v2995_v25 = vadd.f32 %v2994_v23, %v2905_v22 }
 0x4ef   : > { %v3171_v24 = vadd.f32 %v3170_v20, %v3082_v21 }
 0x4f1   : > { %3211 = vst [vmem:[%s4933_s28 + $0xd0] sm:$0xff] %v3171_v24 }
 0x4f4   : > { %v3083_v27 = vpop.f32.mrf.mxu2  ;;  %v3172_v28 = vpop.f32.mrf.mxu3 }
 0x4f5   : > { %v3084_v29 = vadd.f32 %v3083_v27, %v2995_v25  ;;  %v2908_v30 = vpop.f32.mrf.mxu0  ;;  %v2997_v31 = vpop.f32.mrf.mxu1 }
 0x4f6   : > { %v2998_v33 = vadd.f32 %v2997_v31, %v2908_v30 }
 0x4f7   : > { %v3173_v32 = vadd.f32 %v3172_v28, %v3084_v29 }
 0x4f9   : > { %3212 = vst [vmem:[%s4933_s28 + $0xd8] sm:$0xff] %v3173_v32 }
 0x4fc   : > { %v3086_v34 = vpop.f32.mrf.mxu2  ;;  %v3175_v35 = vpop.f32.mrf.mxu3 }
 0x4fd   : > { %v3087_v36 = vadd.f32 %v3086_v34, %v2998_v33  ;;  %v2910_v37 = vpop.f32.mrf.mxu0  ;;  %v2999_v38 = vpop.f32.mrf.mxu1 }
 0x4fe   : > { %v3000_v40 = vadd.f32 %v2999_v38, %v2910_v37 }
 0x4ff   : > { %v3176_v39 = vadd.f32 %v3175_v35, %v3087_v36 }
 0x501   : > { %3213 = vst [vmem:[%s4933_s28 + $0xe0] sm:$0xff] %v3176_v39 }
 0x504   : > { %v3088_v41 = vpop.f32.mrf.mxu2  ;;  %v3177_v42 = vpop.f32.mrf.mxu3 }
 0x505   : > { %v3089_v43 = vadd.f32 %v3088_v41, %v3000_v40  ;;  %v2913_v44 = vpop.f32.mrf.mxu0  ;;  %v3002_v45 = vpop.f32.mrf.mxu1 }
 0x506   : > { %v3003_v47 = vadd.f32 %v3002_v45, %v2913_v44 }
 0x507   : > { %v3178_v46 = vadd.f32 %v3177_v42, %v3089_v43 }
 0x509   : > { %3214 = vst [vmem:[%s4933_s28 + $0xe8] sm:$0xff] %v3178_v46 }
 0x50c   : > { %v3091_v48 = vpop.f32.mrf.mxu2  ;;  %v3180_v49 = vpop.f32.mrf.mxu3 }
 0x50d   : > { %v3092_v50 = vadd.f32 %v3091_v48, %v3003_v47  ;;  %v2915_v52 = vpop.f32.mrf.mxu0  ;;  %v3004_v53 = vpop.f32.mrf.mxu1 }
 0x50e   : > { %v3005_v54 = vadd.f32 %v3004_v53, %v2915_v52 }
 0x50f   : > { %v3181_v51 = vadd.f32 %v3180_v49, %v3092_v50 }
 0x511   : > { %3215 = vst [vmem:[%s4933_s28 + $0xf0] sm:$0xff] %v3181_v51 }
 0x514   : > { %v3093_v55 = vpop.f32.mrf.mxu2  ;;  %v3182_v57 = vpop.f32.mrf.mxu3 }
 0x515   : > { %v3094_v56 = vadd.f32 %v3093_v55, %v3005_v54 }
 0x517   : > { %v3183_v58 = vadd.f32 %v3182_v57, %v3094_v56 }
 0x519   : > { %3216 = vst [vmem:[%s4933_s28 + $0xf8] sm:$0xff] %v3183_v58 }
 0x51a PF: > { %s14_s19 = sadd.s32 1, %s4862_s19   ;;  %s5851_s15 = smov %s4854_s17 }
 0x51b   : > { %p11_p13 = scmp.ge.s32.totalorder %s14_s19, 6   ;;  %s5852_s16 = smov %s4858_s18 }
 0x51c   : > { %s5853_s17 = smov %s5856_s20  ;;  %s5854_s18 = smov %s5860_s21 }
 0x51d   :  { %13 = sbr.rel (!%p11_p13) target bundleno = 3 (0x3), region = 101 }
 0x522   :  { %3242 = vsyncmov [#allocation5] }
 0x525   :  { %s3243_s23 = vpop.sfrf %3242 }
 0x526   :  { %p4236_p0 = scmp.ne.s32.totalorder %s3243_s23, 0 }
 0x528   :  { %3247 = shalt.err (%p4236_p0)  }

</bundles_post_ra>
